<compile_context>
chip_gen: v5e
topology: v5e:2x2
jax: 0.10.0
libtpu: 0.0.40
codegen_flags: <defaults>
</compile_context>

<pallas_src>
import math
from functools import partial

import jax
import jax.numpy as jnp
from jax import lax
from jax.experimental import pallas as pl
from jax.experimental.pallas import tpu as pltpu


# ---------------------------------------------------------------------------
# helpers
# ---------------------------------------------------------------------------
def _pick_tile(dim, candidates):
    """Largest candidate tile that divides `dim`; falls back to the full dim (always legal).
    NOTE: the fallback can produce a large single block for awkward dims — keep dims padded."""
    for c in candidates:
        if dim >= c and dim % c == 0:
            return c
    return dim


def _softplus(x):
    # matches F.softplus (threshold=20)
    return jnp.where(x > 20.0, x, jnp.log1p(jnp.exp(jnp.minimum(x, 20.0))))


_SMALL_WEIGHT_BYTES = 4 * 1024 * 1024   # weight resident-in-VMEM threshold (safe on v5e/v6e/v7x)


# ---------------------------------------------------------------------------
# matmul: 1-D grid with resident weight when it fits, else 3-D tiled with fp32 accumulator
# ---------------------------------------------------------------------------
def _matmul2d_kernel(x_ref, w_ref, o_ref):
    o_ref[...] = jnp.dot(x_ref[...].astype(jnp.bfloat16),
                         w_ref[...].astype(jnp.bfloat16),
                         preferred_element_type=jnp.float32).astype(o_ref.dtype)


def _matmul3d_kernel(x_ref, w_ref, o_ref, acc_ref):
    @pl.when(pl.program_id(2) == 0)
    def _():
        acc_ref[...] = jnp.zeros_like(acc_ref)

    acc_ref[...] += jnp.dot(x_ref[...].astype(jnp.bfloat16),
                            w_ref[...].astype(jnp.bfloat16),
                            preferred_element_type=jnp.float32)

    @pl.when(pl.program_id(2) == pl.num_programs(2) - 1)
    def _():
        o_ref[...] = acc_ref[...].astype(o_ref.dtype)


def matmul(x, w, out_dtype=jnp.bfloat16):
    """(M, K) @ (K, N) -> (M, N)."""
    M, K = x.shape
    K2, N = w.shape
    assert K == K2
    w_bytes = K * N * jnp.dtype(w.dtype).itemsize
    if w_bytes <= _SMALL_WEIGHT_BYTES:
        # Weight fetched once (constant index_map); only activations stream.
        tm = _pick_tile(M, (512, 256, 128, 64, 32, 16, 8))
        while tm > 8 and tm % 2 == 0 and M % (tm // 2) == 0 and tm * K * 2 > _SMALL_WEIGHT_BYTES:
            tm //= 2                      # keep the activation block within a small VMEM budget
        return pl.pallas_call(
            _matmul2d_kernel,
            out_shape=jax.ShapeDtypeStruct((M, N), out_dtype),
            grid=(M // tm,),
            in_specs=[pl.BlockSpec((tm, K), lambda i: (i, 0)),
                      pl.BlockSpec((K, N), lambda i: (0, 0))],
            out_specs=pl.BlockSpec((tm, N), lambda i: (i, 0)),
            compiler_params=pltpu.CompilerParams(dimension_semantics=("parallel",)),
        )(x, w)

    tm = _pick_tile(M, (512, 256, 128, 64, 32, 16, 8))
    tn = _pick_tile(N, (512, 256, 128))
    tk = _pick_tile(K, (512, 256, 128))
    grid = (M // tm, N // tn, K // tk)
    return pl.pallas_call(
        _matmul3d_kernel,
        out_shape=jax.ShapeDtypeStruct((M, N), out_dtype),
        grid=grid,
        in_specs=[pl.BlockSpec((tm, tk), lambda i, j, k: (i, k)),
                  pl.BlockSpec((tk, tn), lambda i, j, k: (k, j))],
        out_specs=pl.BlockSpec((tm, tn), lambda i, j, k: (i, j)),
        scratch_shapes=[pltpu.VMEM((tm, tn), jnp.float32)],
        compiler_params=pltpu.CompilerParams(
            dimension_semantics=("parallel", "parallel", "arbitrary")),
    )(x, w)


# ---------------------------------------------------------------------------
# fused residual-add + RMSNorm (stand-alone; used for the final norm and as a fallback)
# ---------------------------------------------------------------------------
def _add_rmsnorm_kernel(x_ref, r_ref, w_ref, y_ref, nr_ref, *, eps):
    s = x_ref[...].astype(jnp.float32) + r_ref[...].astype(jnp.float32)
    nr_ref[...] = s
    var = jnp.mean(s * s, axis=-1, keepdims=True)
    y_ref[...] = (s * lax.rsqrt(var + eps)
                  * w_ref[...].astype(jnp.float32)).astype(y_ref.dtype)


def add_rmsnorm(x, res, w, eps=1e-5, out_dtype=jnp.bfloat16):
    """Returns (normed, new_residual).  new_residual reuses the incoming residual buffer."""
    M, D = x.shape
    tm = _pick_tile(M, (512, 256, 128, 64, 32, 16, 8))
    return pl.pallas_call(
        partial(_add_rmsnorm_kernel, eps=eps),
        out_shape=(jax.ShapeDtypeStruct((M, D), out_dtype),
                   jax.ShapeDtypeStruct((M, D), jnp.float32)),
        grid=(M // tm,),
        in_specs=[pl.BlockSpec((tm, D), lambda i: (i, 0)),
                  pl.BlockSpec((tm, D), lambda i: (i, 0)),
                  pl.BlockSpec((1, D), lambda i: (0, 0))],
        out_specs=(pl.BlockSpec((tm, D), lambda i: (i, 0)),
                   pl.BlockSpec((tm, D), lambda i: (i, 0))),
        input_output_aliases={1: 1},
        compiler_params=pltpu.CompilerParams(dimension_semantics=("parallel",)),
    )(x, res, w)


# ---------------------------------------------------------------------------
# fused add + RMSNorm + in_proj (x and z halves): normed activations never leave VMEM
# ---------------------------------------------------------------------------
def _norm_inproj_kernel(h_ref, r_ref, nw_ref, wx_ref, wz_ref, x_ref, z_ref, nr_ref, *, eps):
    s = h_ref[...].astype(jnp.float32) + r_ref[...].astype(jnp.float32)
    nr_ref[...] = s
    var = jnp.mean(s * s, axis=-1, keepdims=True)
    normed = (s * lax.rsqrt(var + eps) * nw_ref[...].astype(jnp.float32)).astype(jnp.bfloat16)
    x_ref[...] = jnp.dot(normed, wx_ref[...],
                         preferred_element_type=jnp.float32).astype(x_ref.dtype)
    z_ref[...] = jnp.dot(normed, wz_ref[...],
                         preferred_element_type=jnp.float32).astype(z_ref.dtype)


def addnorm_inproj(hidden, residual, norm_w, wx, wz, eps=1e-5):
    """(hidden + residual) -> RMSNorm -> {x_in, z} projections, residual updated in place.
    Returns (x_in, z, new_residual)."""
    M, D = hidden.shape
    Di = wx.shape[1]
    w_bytes = 2 * D * Di * jnp.dtype(wx.dtype).itemsize
    if w_bytes > _SMALL_WEIGHT_BYTES:
        # fallback: weights too big to keep resident — unfused path
        normed, new_res = add_rmsnorm(hidden, residual, norm_w, eps=eps, out_dtype=jnp.bfloat16)
        return matmul(normed, wx), matmul(normed, wz), new_res

    tm = _pick_tile(M, (512, 256, 128, 64, 32, 16, 8))
    return pl.pallas_call(
        partial(_norm_inproj_kernel, eps=eps),
        out_shape=(jax.ShapeDtypeStruct((M, Di), jnp.bfloat16),
                   jax.ShapeDtypeStruct((M, Di), jnp.bfloat16),
                   jax.ShapeDtypeStruct((M, D), jnp.float32)),
        grid=(M // tm,),
        in_specs=[pl.BlockSpec((tm, D), lambda i: (i, 0)),
                  pl.BlockSpec((tm, D), lambda i: (i, 0)),
                  pl.BlockSpec((1, D), lambda i: (0, 0)),
                  pl.BlockSpec((D, Di), lambda i: (0, 0)),
                  pl.BlockSpec((D, Di), lambda i: (0, 0))],
        out_specs=(pl.BlockSpec((tm, Di), lambda i: (i, 0)),
                   pl.BlockSpec((tm, Di), lambda i: (i, 0)),
                   pl.BlockSpec((tm, D), lambda i: (i, 0))),
        input_output_aliases={1: 2},
        compiler_params=pltpu.CompilerParams(dimension_semantics=("parallel",)),
    )(hidden, residual, norm_w, wx, wz)


# ---------------------------------------------------------------------------
# causal depthwise conv1d + SiLU, chunked over L with an 8-row carried tail
# ---------------------------------------------------------------------------
_CONV_TAIL = 8   # carried boundary rows (>= d_conv - 1, sublane aligned)


def _conv_silu_kernel(x_ref, w_ref, b_ref, o_ref, xpad_ref, *, d_conv):
    lc, C = x_ref.shape
    pad = _CONV_TAIL

    @pl.when(pl.program_id(2) == 0)                   # new (batch, channel-tile): zero the tail
    def _():
        xpad_ref[:pad, :] = jnp.zeros((pad, C), jnp.float32)

    xin = x_ref[...].astype(jnp.float32)              # (lc, C)
    xpad_ref[pad:, :] = xin
    acc = jnp.broadcast_to(b_ref[...].astype(jnp.float32), (lc, C))
    for k in range(d_conv):                           # static unroll over taps
        s = d_conv - 1 - k                            # causal shift of tap k
        wk = w_ref[pl.ds(k, 1), :].astype(jnp.float32)
        if s == 0:
            acc = acc + xin * wk
        else:
            acc = acc + xpad_ref[pad - s: pad - s + lc, :] * wk
    o_ref[...] = (acc * jax.nn.sigmoid(acc)).astype(o_ref.dtype)

    # carry the last rows of this chunk into the head for the next time-chunk
    tail = xpad_ref[lc: lc + pad, :]
    xpad_ref[:pad, :] = tail


def causal_conv_silu(x, w, b, d_conv):
    B, L, C = x.shape
    assert d_conv - 1 <= _CONV_TAIL
    dc = _pick_tile(C, (512, 256, 128))
    if B * (C // dc) < 2 and dc >= 256 and C % (dc // 2) == 0:
        dc //= 2                                      # keep both v7x TensorCores busy
    lc = _pick_tile(L, (512, 256, 128, 64, 32, 16, 8))
    grid = (B, C // dc, L // lc)                      # L chunks MUST stay innermost (state carry)
    return pl.pallas_call(
        partial(_conv_silu_kernel, d_conv=d_conv),
        out_shape=jax.ShapeDtypeStruct((B, L, C), jnp.bfloat16),
        grid=grid,
        in_specs=[pl.BlockSpec((None, lc, dc), lambda bi, ci, li: (bi, li, ci)),
                  pl.BlockSpec((d_conv, dc), lambda bi, ci, li: (0, ci)),
                  pl.BlockSpec((1, dc), lambda bi, ci, li: (0, ci))],
        out_specs=pl.BlockSpec((None, lc, dc), lambda bi, ci, li: (bi, li, ci)),
        scratch_shapes=[pltpu.VMEM((_CONV_TAIL + lc, dc), jnp.float32)],
        compiler_params=pltpu.CompilerParams(
            dimension_semantics=("parallel", "parallel", "arbitrary")),
    )(x, w, b)


# ---------------------------------------------------------------------------
# fused x_proj + dt_proj: dt is lane-dense, B/C emitted as ONE (M, 2*d_state) array
# ---------------------------------------------------------------------------
def _xproj_dtproj_kernel(xc_ref, xw_ref, dtw_ref, dt_ref, bc_ref, *, dt_rank):
    xdbl = jnp.dot(xc_ref[...].astype(jnp.bfloat16), xw_ref[...],
                   preferred_element_type=jnp.float32)                  # (tm, R + 2N)
    dtl = xdbl[:, :dt_rank].astype(jnp.bfloat16)
    dt_ref[...] = jnp.dot(dtl, dtw_ref[...],
                          preferred_element_type=jnp.float32).astype(dt_ref.dtype)
    bc_ref[...] = xdbl[:, dt_rank:].astype(bc_ref.dtype)                # (tm, 2N), single store


def xproj_dtproj(xc, xw, dtw, dt_rank, d_state):
    M, Di = xc.shape
    R2N = xw.shape[1]
    tm = _pick_tile(M, (512, 256, 128, 64, 32, 16, 8))
    return pl.pallas_call(
        partial(_xproj_dtproj_kernel, dt_rank=dt_rank),
        out_shape=(jax.ShapeDtypeStruct((M, Di), jnp.bfloat16),
                   jax.ShapeDtypeStruct((M, 2 * d_state), jnp.bfloat16)),
        grid=(M // tm,),
        in_specs=[pl.BlockSpec((tm, Di), lambda i: (i, 0)),
                  pl.BlockSpec((Di, R2N), lambda i: (0, 0)),
                  pl.BlockSpec((dt_rank, Di), lambda i: (0, 0))],
        out_specs=(pl.BlockSpec((tm, Di), lambda i: (i, 0)),
                   pl.BlockSpec((tm, 2 * d_state), lambda i: (i, 0))),
        compiler_params=pltpu.CompilerParams(dimension_semantics=("parallel",)),
    )(xc, xw, dtw)


# ---------------------------------------------------------------------------
# selective scan: d_inner on lanes, d_state on sublanes; h carried in vregs inside an
# unrolled fori_loop; cross-chunk state in a small VMEM scratch.
# ---------------------------------------------------------------------------
def _scan_kernel(u_ref, dt_ref, z_ref, bc_ref, at_ref, dskip_ref, bias_ref,
                 y_ref, h_ref, da_ref, hbuf_ref, *, d_state, unroll):
    lc = u_ref.shape[0]
    N = d_state

    # state carry requires the time-chunk axis (grid axis 2) to be innermost / "arbitrary"
    @pl.when(pl.program_id(2) == 0)
    def _():
        h_ref[...] = jnp.zeros_like(h_ref)

    # --- vectorized precompute (off the sequential critical path) ----------
    dt = _softplus(dt_ref[...].astype(jnp.float32)
                   + bias_ref[...].astype(jnp.float32))          # (lc, di)
    u = u_ref[...].astype(jnp.float32)                           # (lc, di)
    A_T = at_ref[...]                                            # (N, di)
    bc = bc_ref[...].astype(jnp.float32)                         # (lc, 2N)
    Bc = bc[:, :N]                                               # (lc, N)
    Cc = bc[:, N:]                                               # (lc, N)
    da_ref[...] = jnp.exp(dt[:, None, :] * A_T[None, :, :])      # dA,   (lc, N, di)
    hbuf_ref[...] = (dt * u)[:, None, :] * Bc[:, :, None]        # dB*u, (lc, N, di)

    # --- sequential recurrence: h lives in vector registers ----------------
    # hbuf_ref[t] is read (dB*u) then overwritten with the per-step state h;
    # correctness relies on read-before-write program order inside body().
    def body(t, h):
        h = da_ref[t] * h + hbuf_ref[t]
        hbuf_ref[t] = h
        return h

    h = lax.fori_loop(0, lc, body, h_ref[...], unroll=unroll)
    h_ref[...] = h                                               # cross-chunk carry (once)

    # --- vectorized epilogue: C reduction, D skip, SiLU(z) gate ------------
    y = jnp.sum(hbuf_ref[...] * Cc[:, :, None], axis=1)          # (lc, di)
    y = y + u * dskip_ref[...].astype(jnp.float32)
    z = z_ref[...].astype(jnp.float32)
    y_ref[...] = (y * (z * jax.nn.sigmoid(z))).astype(y_ref.dtype)


def selective_scan(u, dt, z, bc, A_T, Dskip, dt_bias):
    B, L, Di = u.shape
    N = A_T.shape[0]
    di = _pick_tile(Di, (256, 128))
    if B * (Di // di) < 2 and di >= 256 and Di % (di // 2) == 0:
        di //= 2                                                 # feed both v7x TensorCores
    # budget the two (lc, N, di) fp32 scratch buffers to ~8 MiB
    lc_cands = tuple(c for c in (128, 64, 32, 16, 8) if 2 * c * N * di * 4 <= 8 * 1024 * 1024) or (8,)
    lc = _pick_tile(L, lc_cands)
    grid = (B, Di // di, L // lc)                                # time chunks MUST stay innermost

    spec_di = pl.BlockSpec((None, lc, di), lambda b, i, j: (b, j, i))
    spec_bc = pl.BlockSpec((None, lc, 2 * N), lambda b, i, j: (b, j, 0))
    spec_row = pl.BlockSpec((1, di), lambda b, i, j: (0, i))

    return pl.pallas_call(
        partial(_scan_kernel, d_state=N, unroll=min(8, lc)),
        out_shape=jax.ShapeDtypeStruct((B, L, Di), jnp.bfloat16),
        grid=grid,
        in_specs=[spec_di, spec_di, spec_di, spec_bc,
                  pl.BlockSpec((N, di), lambda b, i, j: (0, i)),
                  spec_row, spec_row],
        out_specs=spec_di,
        scratch_shapes=[pltpu.VMEM((N, di), jnp.float32),        # h state (carried over chunks)
                        pltpu.VMEM((lc, N, di), jnp.float32),    # dA for the chunk
                        pltpu.VMEM((lc, N, di), jnp.float32)],   # dBu / per-step states
        compiler_params=pltpu.CompilerParams(
            dimension_semantics=("parallel", "parallel", "arbitrary")),
    )(u, dt, z, bc, A_T, Dskip, dt_bias)


# ---------------------------------------------------------------------------
# model glue (params, mixer block, layer loop)
# ---------------------------------------------------------------------------
def init_params(key, vocab_size, d_model, n_layer, d_state, d_conv, expand,
                pad_vocab_size_multiple=8):
    if vocab_size % pad_vocab_size_multiple != 0:
        vocab_size += pad_vocab_size_multiple - vocab_size % pad_vocab_size_multiple
    d_inner = expand * d_model
    dt_rank = math.ceil(d_model / 16)
    keys = jax.random.split(key, 1 + n_layer)
    params = {
        "embedding": 0.02 * jax.random.normal(keys[0], (vocab_size, d_model), jnp.float32),
        "norm_f_w": jnp.ones((1, d_model), jnp.float32),
        "layers": [],
    }
    # A = -exp(A_log), stored transposed (d_state, d_inner) so the scan gets it lane-dense
    A_init = jnp.tile(jnp.arange(1, d_state + 1, dtype=jnp.float32)[:, None], (1, d_inner))
    for i in range(n_layer):
        lk = jax.random.split(keys[1 + i], 7)
        layer = dict(
            norm_w=jnp.ones((1, d_model), jnp.float32),
            # weights pre-transposed to (K, N) and stored bf16 (fp32 accumulation in-kernel)
            in_proj_x_w=(0.02 * jax.random.normal(lk[0], (d_model, d_inner))).astype(jnp.bfloat16),
            in_proj_z_w=(0.02 * jax.random.normal(lk[1], (d_model, d_inner))).astype(jnp.bfloat16),
            conv_w=(0.1 * jax.random.normal(lk[2], (d_conv, d_inner))).astype(jnp.bfloat16),
            conv_b=0.01 * jax.random.normal(lk[3], (1, d_inner), jnp.float32),
            x_proj_w=(0.02 * jax.random.normal(lk[4], (d_inner, dt_rank + 2 * d_state))).astype(jnp.bfloat16),
            dt_proj_w=(0.1 * jax.random.normal(lk[5], (dt_rank, d_inner))).astype(jnp.bfloat16),
            dt_bias=jnp.full((1, d_inner), float(math.log(math.expm1(0.01))), jnp.float32),
            A_log_T=jnp.log(A_init),
            D=jnp.ones((1, d_inner), jnp.float32),
            out_proj_w=(0.02 * jax.random.normal(lk[6], (d_inner, d_model))).astype(jnp.bfloat16),
        )
        params["layers"].append(layer)
    return params, vocab_size


def mamba_block(lp, hidden, residual, Bsz, L):
    """One prenorm Mamba block: (hidden, residual) -> (mixer_out, new_residual)."""
    D, Di = lp["in_proj_x_w"].shape
    N = lp["A_log_T"].shape[0]
    d_conv = lp["conv_w"].shape[0]
    R = lp["dt_proj_w"].shape[0]

    x_in, z, residual = addnorm_inproj(hidden, residual, lp["norm_w"],
                                       lp["in_proj_x_w"], lp["in_proj_z_w"])  # (BL, Di) x2
    xc = causal_conv_silu(x_in.reshape(Bsz, L, Di),
                          lp["conv_w"], lp["conv_b"], d_conv)                 # (B, L, Di)
    dt, bc = xproj_dtproj(xc.reshape(Bsz * L, Di),
                          lp["x_proj_w"], lp["dt_proj_w"], R, N)              # (BL, Di), (BL, 2N)
    A_T = -jnp.exp(lp["A_log_T"])                                             # (N, Di) fp32
    y = selective_scan(xc, dt.reshape(Bsz, L, Di), z.reshape(Bsz, L, Di),
                       bc.reshape(Bsz, L, 2 * N), A_T, lp["D"], lp["dt_bias"])
    hidden = matmul(y.reshape(Bsz * L, Di), lp["out_proj_w"])                 # (BL, D)
    return hidden, residual


@jax.jit
def dna_embedding_mamba_forward(params, input_ids):
    """Equivalent of DNAEmbeddingModelMamba.forward -> (hidden_states, None)."""
    emb = params["embedding"]
    Bsz, L = input_ids.shape
    D = emb.shape[1]
    hidden = jnp.take(emb, input_ids, axis=0).reshape(Bsz * L, D)          # (BL, D) f32
    residual = jnp.zeros((Bsz * L, D), jnp.float32)                        # residual_in_fp32
    for lp in params["layers"]:
        hidden, residual = mamba_block(lp, hidden, residual, Bsz, L)
    final, _ = add_rmsnorm(hidden, residual, params["norm_f_w"], out_dtype=jnp.float32)
    # TODO(synk): inference_params (incremental decode state caching) is not implemented.
    return final.reshape(Bsz, L, D), None


# ---------------------------------------------------------------------------
if __name__ == "__main__":
    key = jax.random.PRNGKey(0)
    k_param, k_ids = jax.random.split(key)

    # Small MambaConfig-like settings
    B, L = 2, 8
    d_model, n_layer = 32, 2
    vocab_size = 12            # padded to multiple of 8 -> 16
    d_state, d_conv, expand = 16, 4, 2

    params, padded_vocab = init_params(k_param, vocab_size, d_model, n_layer,
                                       d_state, d_conv, expand)
    input_ids = jax.random.randint(k_ids, (B, L), 0, vocab_size, dtype=jnp.int32)

    hidden_states, _ = dna_embedding_mamba_forward(params, input_ids)
    hidden_states = jax.block_until_ready(hidden_states)

    assert hidden_states.shape == (B, L, d_model)
    assert bool(jnp.all(jnp.isfinite(hidden_states)))
    print("KERNEL_OK")
</pallas_src>

<mosaic_0001>
module attributes {stable_mosaic.version = 11 : i64} {
  func.func @_xproj_dtproj_kernel(%arg0: i32, %arg1: memref<16x64xbf16, #tpu.memory_space<vmem>>, %arg2: memref<64x34xbf16, #tpu.memory_space<vmem>>, %arg3: memref<2x64xbf16, #tpu.memory_space<vmem>>, %arg4: memref<16x64xbf16, #tpu.memory_space<vmem>>, %arg5: memref<16x32xbf16, #tpu.memory_space<vmem>>) attributes {dimension_semantics = [#tpu.dimension_semantics<parallel>], iteration_bounds = array<i64: 1>, scalar_prefetch = 0 : i64, scratch_operands = 0 : i64, tpu.core_type = #tpu.core_type<tc>, window_params = [{transform_indices = @transform_0, window_bounds = array<i64: 16, 64>}, {pipeline_mode = #tpu.pipeline_mode<synchronous>, transform_indices = @transform_1, window_bounds = array<i64: 64, 34>}, {pipeline_mode = #tpu.pipeline_mode<synchronous>, transform_indices = @transform_2, window_bounds = array<i64: 2, 64>}, {transform_indices = @transform_3, window_bounds = array<i64: 16, 64>}, {transform_indices = @transform_4, window_bounds = array<i64: 16, 32>}]} {
    %c0 = arith.constant 0 : index
    %c0_0 = arith.constant 0 : index
    %0 = vector.load %arg1[%c0, %c0_0] : memref<16x64xbf16, #tpu.memory_space<vmem>>, vector<16x64xbf16>
    %c0_1 = arith.constant 0 : index
    %c0_2 = arith.constant 0 : index
    %1 = vector.load %arg2[%c0_1, %c0_2] : memref<64x34xbf16, #tpu.memory_space<vmem>>, vector<64x34xbf16>
    %cst = arith.constant dense<0.000000e+00> : vector<16x34xf32>
    %2 = tpu.matmul %0, %1, %cst {dimension_numbers = #tpu.dot_dimension_numbers<[1], [0], [0], [1], [0, 0, 1, 1], [], []>} : vector<16x64xbf16>, vector<64x34xbf16>, vector<16x34xf32> -> vector<16x34xf32>
    %3 = vector.extract_strided_slice %2 {offsets = [0, 0], sizes = [16, 2], strides = [1, 1]} : vector<16x34xf32> to vector<16x2xf32>
    %4 = arith.truncf %3 : vector<16x2xf32> to vector<16x2xbf16>
    %c0_3 = arith.constant 0 : index
    %c0_4 = arith.constant 0 : index
    %5 = vector.load %arg3[%c0_3, %c0_4] : memref<2x64xbf16, #tpu.memory_space<vmem>>, vector<2x64xbf16>
    %cst_5 = arith.constant dense<0.000000e+00> : vector<16x64xf32>
    %6 = tpu.matmul %4, %5, %cst_5 {dimension_numbers = #tpu.dot_dimension_numbers<[1], [0], [0], [1], [0, 0, 1, 1], [], []>} : vector<16x2xbf16>, vector<2x64xbf16>, vector<16x64xf32> -> vector<16x64xf32>
    %7 = arith.truncf %6 : vector<16x64xf32> to vector<16x64xbf16>
    %c0_6 = arith.constant 0 : index
    %c0_7 = arith.constant 0 : index
    %8 = vector.load %arg4[%c0_6, %c0_7] : memref<16x64xbf16, #tpu.memory_space<vmem>>, vector<16x64xbf16>
    tpu.vector_store %arg4[%c0_6, %c0_7], %7 {strides = array<i32>} : memref<16x64xbf16, #tpu.memory_space<vmem>>, vector<16x64xbf16>,
    %9 = vector.extract_strided_slice %2 {offsets = [0, 2], sizes = [16, 32], strides = [1, 1]} : vector<16x34xf32> to vector<16x32xf32>
    %10 = arith.truncf %9 : vector<16x32xf32> to vector<16x32xbf16>
    %c0_8 = arith.constant 0 : index
    %c0_9 = arith.constant 0 : index
    %11 = vector.load %arg5[%c0_8, %c0_9] : memref<16x32xbf16, #tpu.memory_space<vmem>>, vector<16x32xbf16>
    tpu.vector_store %arg5[%c0_8, %c0_9], %10 {strides = array<i32>} : memref<16x32xbf16, #tpu.memory_space<vmem>>, vector<16x32xbf16>,
    return
  }
  func.func @transform_0(%arg0: i32) -> (i32, i32) {
    %c0_i32 = arith.constant 0 : i32
    %c0_i32_0 = arith.constant 0 : i32
    return %arg0, %c0_i32 : i32, i32
  }
  func.func @transform_1(%arg0: i32) -> (i32, i32) {
    %c0_i32 = arith.constant 0 : i32
    %c0_i32_0 = arith.constant 0 : i32
    %c0_i32_1 = arith.constant 0 : i32
    return %c0_i32, %c0_i32_0 : i32, i32
  }
  func.func @transform_2(%arg0: i32) -> (i32, i32) {
    %c0_i32 = arith.constant 0 : i32
    %c0_i32_0 = arith.constant 0 : i32
    %c0_i32_1 = arith.constant 0 : i32
    return %c0_i32, %c0_i32_0 : i32, i32
  }
  func.func @transform_3(%arg0: i32) -> (i32, i32) {
    %c0_i32 = arith.constant 0 : i32
    %c0_i32_0 = arith.constant 0 : i32
    return %arg0, %c0_i32 : i32, i32
  }
  func.func @transform_4(%arg0: i32) -> (i32, i32) {
    %c0_i32 = arith.constant 0 : i32
    %c0_i32_0 = arith.constant 0 : i32
    return %arg0, %c0_i32 : i32, i32
  }
}

module attributes {stable_mosaic.version = 11 : i64} {
  func.func @_conv_silu_kernel(%arg0: i32, %arg1: i32, %arg2: i32, %arg3: memref<1x8x64xbf16, #tpu.memory_space<vmem>>, %arg4: memref<4x64xbf16, #tpu.memory_space<vmem>>, %arg5: memref<1x64xf32, #tpu.memory_space<vmem>>, %arg6: memref<1x8x64xbf16, #tpu.memory_space<vmem>>, %arg7: memref<16x64xf32, #tpu.memory_space<vmem>>) attributes {dimension_semantics = [#tpu.dimension_semantics<parallel>, #tpu.dimension_semantics<parallel>, #tpu.dimension_semantics<arbitrary>], iteration_bounds = array<i64: 2, 1, 1>, scalar_prefetch = 0 : i64, scratch_operands = 1 : i64, tpu.core_type = #tpu.core_type<tc>, window_params = [{transform_indices = @transform_0, window_bounds = array<i64: 1, 8, 64>}, {transform_indices = @transform_1, window_bounds = array<i64: 4, 64>}, {transform_indices = @transform_2, window_bounds = array<i64: 1, 64>}, {transform_indices = @transform_3, window_bounds = array<i64: 1, 8, 64>}]} {
    %c0_i32 = arith.constant 0 : i32
    %0 = arith.cmpi eq, %arg2, %c0_i32 : i32
    %1 = arith.extui %0 : i1 to i32
    %c0_i32_0 = arith.constant 0 : i32
    %2 = arith.cmpi ne, %1, %c0_i32_0 : i32
    scf.if %2 {
      %cst_21 = arith.constant 0.000000e+00 : f32
      %45 = vector.broadcast %cst_21 : f32 to vector<8x64xf32>
      %c0_22 = arith.constant 0 : index
      %c0_23 = arith.constant 0 : index
      %46 = vector.load %arg7[%c0_22, %c0_23] : memref<16x64xf32, #tpu.memory_space<vmem>>, vector<8x64xf32>
      tpu.vector_store %arg7[%c0_22, %c0_23], %45 {strides = array<i32>} : memref<16x64xf32, #tpu.memory_space<vmem>>, vector<8x64xf32>,
    } else {
    }
    %c0 = arith.constant 0 : index
    %c0_1 = arith.constant 0 : index
    %c0_2 = arith.constant 0 : index
    %3 = vector.load %arg3[%c0, %c0_1, %c0_2] : memref<1x8x64xbf16, #tpu.memory_space<vmem>>, vector<1x8x64xbf16>
    %4 = vector.shape_cast %3 : vector<1x8x64xbf16> to vector<8x64xbf16>
    %5 = arith.extf %4 : vector<8x64xbf16> to vector<8x64xf32>
    %c8 = arith.constant 8 : index
    %c0_3 = arith.constant 0 : index
    %6 = vector.load %arg7[%c8, %c0_3] : memref<16x64xf32, #tpu.memory_space<vmem>>, vector<8x64xf32>
    tpu.vector_store %arg7[%c8, %c0_3], %5 {strides = array<i32>} : memref<16x64xf32, #tpu.memory_space<vmem>>, vector<8x64xf32>,
    %c0_4 = arith.constant 0 : index
    %c0_5 = arith.constant 0 : index
    %7 = vector.load %arg5[%c0_4, %c0_5] : memref<1x64xf32, #tpu.memory_space<vmem>>, vector<1x64xf32>
    %8 = vector.shape_cast %7 : vector<1x64xf32> to vector<1x64xf32>
    %9 = vector.broadcast %8 : vector<1x64xf32> to vector<8x64xf32>
    %c0_6 = arith.constant 0 : index
    %c0_7 = arith.constant 0 : index
    %10 = vector.load %arg4[%c0_6, %c0_7] : memref<4x64xbf16, #tpu.memory_space<vmem>>, vector<1x64xbf16>
    %11 = arith.extf %10 : vector<1x64xbf16> to vector<1x64xf32>
    %c5 = arith.constant 5 : index
    %c0_8 = arith.constant 0 : index
    %12 = vector.load %arg7[%c5, %c0_8] : memref<16x64xf32, #tpu.memory_space<vmem>>, vector<8x64xf32>
    %13 = vector.broadcast %11 : vector<1x64xf32> to vector<8x64xf32>
    %14 = arith.mulf %12, %13 : vector<8x64xf32>
    %15 = arith.addf %9, %14 : vector<8x64xf32>
    %c1 = arith.constant 1 : index
    %c0_9 = arith.constant 0 : index
    %16 = vector.load %arg4[%c1, %c0_9] : memref<4x64xbf16, #tpu.memory_space<vmem>>, vector<1x64xbf16>
    %17 = arith.extf %16 : vector<1x64xbf16> to vector<1x64xf32>
    %c6 = arith.constant 6 : index
    %c0_10 = arith.constant 0 : index
    %18 = vector.load %arg7[%c6, %c0_10] : memref<16x64xf32, #tpu.memory_space<vmem>>, vector<8x64xf32>
    %19 = vector.broadcast %17 : vector<1x64xf32> to vector<8x64xf32>
    %20 = arith.mulf %18, %19 : vector<8x64xf32>
    %21 = arith.addf %15, %20 : vector<8x64xf32>
    %c2 = arith.constant 2 : index
    %c0_11 = arith.constant 0 : index
    %22 = vector.load %arg4[%c2, %c0_11] : memref<4x64xbf16, #tpu.memory_space<vmem>>, vector<1x64xbf16>
    %23 = arith.extf %22 : vector<1x64xbf16> to vector<1x64xf32>
    %c7 = arith.constant 7 : index
    %c0_12 = arith.constant 0 : index
    %24 = vector.load %arg7[%c7, %c0_12] : memref<16x64xf32, #tpu.memory_space<vmem>>, vector<8x64xf32>
    %25 = vector.broadcast %23 : vector<1x64xf32> to vector<8x64xf32>
    %26 = arith.mulf %24, %25 : vector<8x64xf32>
    %27 = arith.addf %21, %26 : vector<8x64xf32>
    %c3 = arith.constant 3 : index
    %c0_13 = arith.constant 0 : index
    %28 = vector.load %arg4[%c3, %c0_13] : memref<4x64xbf16, #tpu.memory_space<vmem>>, vector<1x64xbf16>
    %29 = arith.extf %28 : vector<1x64xbf16> to vector<1x64xf32>
    %30 = vector.broadcast %29 : vector<1x64xf32> to vector<8x64xf32>
    %31 = arith.mulf %5, %30 : vector<8x64xf32>
    %32 = arith.addf %27, %31 : vector<8x64xf32>
    %33 = arith.negf %32 : vector<8x64xf32>
    %34 = math.exp %33 : vector<8x64xf32>
    %cst = arith.constant 1.000000e+00 : f32
    %35 = vector.broadcast %cst : f32 to vector<8x64xf32>
    %36 = arith.addf %35, %34 : vector<8x64xf32>
    %37 = arith.divf %35, %36 : vector<8x64xf32>
    %38 = arith.mulf %32, %37 : vector<8x64xf32>
    %39 = arith.truncf %38 : vector<8x64xf32> to vector<8x64xbf16>
    %c0_14 = arith.constant 0 : index
    %c0_15 = arith.constant 0 : index
    %c0_16 = arith.constant 0 : index
    %40 = vector.load %arg6[%c0_14, %c0_15, %c0_16] : memref<1x8x64xbf16, #tpu.memory_space<vmem>>, vector<1x8x64xbf16>
    %41 = vector.shape_cast %40 : vector<1x8x64xbf16> to vector<8x64xbf16>
    %42 = vector.shape_cast %39 : vector<8x64xbf16> to vector<1x8x64xbf16>
    tpu.vector_store %arg6[%c0_14, %c0_15, %c0_16], %42 {strides = array<i32>} : memref<1x8x64xbf16, #tpu.memory_space<vmem>>, vector<1x8x64xbf16>,
    %c8_17 = arith.constant 8 : index
    %c0_18 = arith.constant 0 : index
    %43 = vector.load %arg7[%c8_17, %c0_18] : memref<16x64xf32, #tpu.memory_space<vmem>>, vector<8x64xf32>
    %c0_19 = arith.constant 0 : index
    %c0_20 = arith.constant 0 : index
    %44 = vector.load %arg7[%c0_19, %c0_20] : memref<16x64xf32, #tpu.memory_space<vmem>>, vector<8x64xf32>
    tpu.vector_store %arg7[%c0_19, %c0_20], %43 {strides = array<i32>} : memref<16x64xf32, #tpu.memory_space<vmem>>, vector<8x64xf32>,
    return
  }
  func.func @transform_0(%arg0: i32, %arg1: i32, %arg2: i32) -> (i32, i32, i32) {
    %c0_i32 = arith.constant 0 : i32
    return %arg0, %arg2, %arg1 : i32, i32, i32
  }
  func.func @transform_1(%arg0: i32, %arg1: i32, %arg2: i32) -> (i32, i32) {
    %c0_i32 = arith.constant 0 : i32
    %c0_i32_0 = arith.constant 0 : i32
    return %c0_i32, %arg1 : i32, i32
  }
  func.func @transform_2(%arg0: i32, %arg1: i32, %arg2: i32) -> (i32, i32) {
    %c0_i32 = arith.constant 0 : i32
    %c0_i32_0 = arith.constant 0 : i32
    return %c0_i32, %arg1 : i32, i32
  }
  func.func @transform_3(%arg0: i32, %arg1: i32, %arg2: i32) -> (i32, i32, i32) {
    %c0_i32 = arith.constant 0 : i32
    return %arg0, %arg2, %arg1 : i32, i32, i32
  }
}

module attributes {stable_mosaic.version = 11 : i64} {
  func.func @_norm_inproj_kernel(%arg0: i32, %arg1: memref<16x32xf32, #tpu.memory_space<vmem>>, %arg2: memref<16x32xf32, #tpu.memory_space<vmem>>, %arg3: memref<1x32xf32, #tpu.memory_space<vmem>>, %arg4: memref<32x64xbf16, #tpu.memory_space<vmem>>, %arg5: memref<32x64xbf16, #tpu.memory_space<vmem>>, %arg6: memref<16x64xbf16, #tpu.memory_space<vmem>>, %arg7: memref<16x64xbf16, #tpu.memory_space<vmem>>, %arg8: memref<16x32xf32, #tpu.memory_space<vmem>>) attributes {dimension_semantics = [#tpu.dimension_semantics<parallel>], iteration_bounds = array<i64: 1>, scalar_prefetch = 0 : i64, scratch_operands = 0 : i64, tpu.core_type = #tpu.core_type<tc>, window_params = [{transform_indices = @transform_0, window_bounds = array<i64: 16, 32>}, {transform_indices = @transform_1, window_bounds = array<i64: 16, 32>}, {pipeline_mode = #tpu.pipeline_mode<synchronous>, transform_indices = @transform_2, window_bounds = array<i64: 1, 32>}, {pipeline_mode = #tpu.pipeline_mode<synchronous>, transform_indices = @transform_3, window_bounds = array<i64: 32, 64>}, {pipeline_mode = #tpu.pipeline_mode<synchronous>, transform_indices = @transform_4, window_bounds = array<i64: 32, 64>}, {transform_indices = @transform_5, window_bounds = array<i64: 16, 64>}, {transform_indices = @transform_6, window_bounds = array<i64: 16, 64>}, {transform_indices = @transform_7, window_bounds = array<i64: 16, 32>}]} {
    %c0 = arith.constant 0 : index
    %c0_0 = arith.constant 0 : index
    %0 = vector.load %arg1[%c0, %c0_0] : memref<16x32xf32, #tpu.memory_space<vmem>>, vector<16x32xf32>
    %c0_1 = arith.constant 0 : index
    %c0_2 = arith.constant 0 : index
    %1 = vector.load %arg2[%c0_1, %c0_2] : memref<16x32xf32, #tpu.memory_space<vmem>>, vector<16x32xf32>
    %2 = arith.addf %0, %1 : vector<16x32xf32>
    %c0_3 = arith.constant 0 : index
    %c0_4 = arith.constant 0 : index
    %3 = vector.load %arg8[%c0_3, %c0_4] : memref<16x32xf32, #tpu.memory_space<vmem>>, vector<16x32xf32>
    tpu.vector_store %arg8[%c0_3, %c0_4], %2 {strides = array<i32>} : memref<16x32xf32, #tpu.memory_space<vmem>>, vector<16x32xf32>,
    %4 = arith.mulf %2, %2 : vector<16x32xf32>
    %cst = arith.constant dense<0.000000e+00> : vector<16xf32>
    %5 = vector.multi_reduction <add>, %4, %cst [1] : vector<16x32xf32> to vector<16xf32>
    %6 = vector.shape_cast %5 : vector<16xf32> to vector<16x1xf32>
    %cst_5 = arith.constant 3.200000e+01 : f32
    %7 = vector.broadcast %cst_5 : f32 to vector<16x1xf32>
    %8 = arith.divf %6, %7 : vector<16x1xf32>
    %cst_6 = arith.constant 9.99999974E-6 : f32
    %9 = vector.broadcast %cst_6 : f32 to vector<16x1xf32>
    %10 = arith.addf %8, %9 : vector<16x1xf32>
    %11 = math.rsqrt %10 : vector<16x1xf32>
    %12 = vector.broadcast %11 : vector<16x1xf32> to vector<16x32xf32>
    %13 = arith.mulf %2, %12 : vector<16x32xf32>
    %c0_7 = arith.constant 0 : index
    %c0_8 = arith.constant 0 : index
    %14 = vector.load %arg3[%c0_7, %c0_8] : memref<1x32xf32, #tpu.memory_space<vmem>>, vector<1x32xf32>
    %15 = vector.broadcast %14 : vector<1x32xf32> to vector<16x32xf32>
    %16 = arith.mulf %13, %15 : vector<16x32xf32>
    %17 = arith.truncf %16 : vector<16x32xf32> to vector<16x32xbf16>
    %c0_9 = arith.constant 0 : index
    %c0_10 = arith.constant 0 : index
    %18 = vector.load %arg4[%c0_9, %c0_10] : memref<32x64xbf16, #tpu.memory_space<vmem>>, vector<32x64xbf16>
    %cst_11 = arith.constant dense<0.000000e+00> : vector<16x64xf32>
    %19 = tpu.matmul %17, %18, %cst_11 {dimension_numbers = #tpu.dot_dimension_numbers<[1], [0], [0], [1], [0, 0, 1, 1], [], []>} : vector<16x32xbf16>, vector<32x64xbf16>, vector<16x64xf32> -> vector<16x64xf32>
    %20 = arith.truncf %19 : vector<16x64xf32> to vector<16x64xbf16>
    %c0_12 = arith.constant 0 : index
    %c0_13 = arith.constant 0 : index
    %21 = vector.load %arg6[%c0_12, %c0_13] : memref<16x64xbf16, #tpu.memory_space<vmem>>, vector<16x64xbf16>
    tpu.vector_store %arg6[%c0_12, %c0_13], %20 {strides = array<i32>} : memref<16x64xbf16, #tpu.memory_space<vmem>>, vector<16x64xbf16>,
    %c0_14 = arith.constant 0 : index
    %c0_15 = arith.constant 0 : index
    %22 = vector.load %arg5[%c0_14, %c0_15] : memref<32x64xbf16, #tpu.memory_space<vmem>>, vector<32x64xbf16>
    %cst_16 = arith.constant dense<0.000000e+00> : vector<16x64xf32>
    %23 = tpu.matmul %17, %22, %cst_16 {dimension_numbers = #tpu.dot_dimension_numbers<[1], [0], [0], [1], [0, 0, 1, 1], [], []>} : vector<16x32xbf16>, vector<32x64xbf16>, vector<16x64xf32> -> vector<16x64xf32>
    %24 = arith.truncf %23 : vector<16x64xf32> to vector<16x64xbf16>
    %c0_17 = arith.constant 0 : index
    %c0_18 = arith.constant 0 : index
    %25 = vector.load %arg7[%c0_17, %c0_18] : memref<16x64xbf16, #tpu.memory_space<vmem>>, vector<16x64xbf16>
    tpu.vector_store %arg7[%c0_17, %c0_18], %24 {strides = array<i32>} : memref<16x64xbf16, #tpu.memory_space<vmem>>, vector<16x64xbf16>,
    return
  }
  func.func @transform_0(%arg0: i32) -> (i32, i32) {
    %c0_i32 = arith.constant 0 : i32
    %c0_i32_0 = arith.constant 0 : i32
    return %arg0, %c0_i32 : i32, i32
  }
  func.func @transform_1(%arg0: i32) -> (i32, i32) {
    %c0_i32 = arith.constant 0 : i32
    %c0_i32_0 = arith.constant 0 : i32
    return %arg0, %c0_i32 : i32, i32
  }
  func.func @transform_2(%arg0: i32) -> (i32, i32) {
    %c0_i32 = arith.constant 0 : i32
    %c0_i32_0 = arith.constant 0 : i32
    %c0_i32_1 = arith.constant 0 : i32
    return %c0_i32, %c0_i32_0 : i32, i32
  }
  func.func @transform_3(%arg0: i32) -> (i32, i32) {
    %c0_i32 = arith.constant 0 : i32
    %c0_i32_0 = arith.constant 0 : i32
    %c0_i32_1 = arith.constant 0 : i32
    return %c0_i32, %c0_i32_0 : i32, i32
  }
  func.func @transform_4(%arg0: i32) -> (i32, i32) {
    %c0_i32 = arith.constant 0 : i32
    %c0_i32_0 = arith.constant 0 : i32
    %c0_i32_1 = arith.constant 0 : i32
    return %c0_i32, %c0_i32_0 : i32, i32
  }
  func.func @transform_5(%arg0: i32) -> (i32, i32) {
    %c0_i32 = arith.constant 0 : i32
    %c0_i32_0 = arith.constant 0 : i32
    return %arg0, %c0_i32 : i32, i32
  }
  func.func @transform_6(%arg0: i32) -> (i32, i32) {
    %c0_i32 = arith.constant 0 : i32
    %c0_i32_0 = arith.constant 0 : i32
    return %arg0, %c0_i32 : i32, i32
  }
  func.func @transform_7(%arg0: i32) -> (i32, i32) {
    %c0_i32 = arith.constant 0 : i32
    %c0_i32_0 = arith.constant 0 : i32
    return %arg0, %c0_i32 : i32, i32
  }
}

module attributes {stable_mosaic.version = 11 : i64} {
  func.func @_scan_kernel(%arg0: i32, %arg1: i32, %arg2: i32, %arg3: memref<1x8x64xbf16, #tpu.memory_space<vmem>>, %arg4: memref<1x8x64xbf16, #tpu.memory_space<vmem>>, %arg5: memref<1x8x64xbf16, #tpu.memory_space<vmem>>, %arg6: memref<1x8x32xbf16, #tpu.memory_space<vmem>>, %arg7: memref<16x64xf32, #tpu.memory_space<vmem>>, %arg8: memref<1x64xf32, #tpu.memory_space<vmem>>, %arg9: memref<1x64xf32, #tpu.memory_space<vmem>>, %arg10: memref<1x8x64xbf16, #tpu.memory_space<vmem>>, %arg11: memref<16x64xf32, #tpu.memory_space<vmem>>, %arg12: memref<8x16x64xf32, #tpu.memory_space<vmem>>, %arg13: memref<8x16x64xf32, #tpu.memory_space<vmem>>) attributes {dimension_semantics = [#tpu.dimension_semantics<parallel>, #tpu.dimension_semantics<parallel>, #tpu.dimension_semantics<arbitrary>], iteration_bounds = array<i64: 2, 1, 1>, scalar_prefetch = 0 : i64, scratch_operands = 3 : i64, tpu.core_type = #tpu.core_type<tc>, window_params = [{transform_indices = @transform_0, window_bounds = array<i64: 1, 8, 64>}, {transform_indices = @transform_1, window_bounds = array<i64: 1, 8, 64>}, {transform_indices = @transform_2, window_bounds = array<i64: 1, 8, 64>}, {transform_indices = @transform_3, window_bounds = array<i64: 1, 8, 32>}, {transform_indices = @transform_4, window_bounds = array<i64: 16, 64>}, {transform_indices = @transform_5, window_bounds = array<i64: 1, 64>}, {transform_indices = @transform_6, window_bounds = array<i64: 1, 64>}, {transform_indices = @transform_7, window_bounds = array<i64: 1, 8, 64>}]} {
    %c0_i32 = arith.constant 0 : i32
    %0 = arith.cmpi eq, %arg2, %c0_i32 : i32
    %1 = arith.extui %0 : i1 to i32
    %c0_i32_0 = arith.constant 0 : i32
    %2 = arith.cmpi ne, %1, %c0_i32_0 : i32
    scf.if %2 {
      %cst_86 = arith.constant 0.000000e+00 : f32
      %160 = vector.broadcast %cst_86 : f32 to vector<16x64xf32>
      %c0_87 = arith.constant 0 : index
      %c0_88 = arith.constant 0 : index
      %161 = vector.load %arg11[%c0_87, %c0_88] : memref<16x64xf32, #tpu.memory_space<vmem>>, vector<16x64xf32>
      tpu.vector_store %arg11[%c0_87, %c0_88], %160 {strides = array<i32>} : memref<16x64xf32, #tpu.memory_space<vmem>>, vector<16x64xf32>,
    } else {
    }
    %c0 = arith.constant 0 : index
    %c0_1 = arith.constant 0 : index
    %c0_2 = arith.constant 0 : index
    %3 = vector.load %arg4[%c0, %c0_1, %c0_2] : memref<1x8x64xbf16, #tpu.memory_space<vmem>>, vector<1x8x64xbf16>
    %4 = vector.shape_cast %3 : vector<1x8x64xbf16> to vector<8x64xbf16>
    %5 = arith.extf %4 : vector<8x64xbf16> to vector<8x64xf32>
    %c0_3 = arith.constant 0 : index
    %c0_4 = arith.constant 0 : index
    %6 = vector.load %arg9[%c0_3, %c0_4] : memref<1x64xf32, #tpu.memory_space<vmem>>, vector<1x64xf32>
    %7 = vector.broadcast %6 : vector<1x64xf32> to vector<8x64xf32>
    %8 = arith.addf %5, %7 : vector<8x64xf32>
    %cst = arith.constant 2.000000e+01 : f32
    %9 = vector.broadcast %cst : f32 to vector<8x64xf32>
    %10 = arith.cmpf ogt, %8, %9 : vector<8x64xf32>
    %cst_5 = arith.constant 2.000000e+01 : f32
    %11 = vector.broadcast %cst_5 : f32 to vector<8x64xf32>
    %12 = arith.minimumf %8, %11 : vector<8x64xf32>
    %13 = math.exp %12 : vector<8x64xf32>
    %14 = math.log1p %13 : vector<8x64xf32>
    %15 = arith.select %10, %8, %14 : vector<8x64xi1>, vector<8x64xf32>
    %c0_6 = arith.constant 0 : index
    %c0_7 = arith.constant 0 : index
    %c0_8 = arith.constant 0 : index
    %16 = vector.load %arg3[%c0_6, %c0_7, %c0_8] : memref<1x8x64xbf16, #tpu.memory_space<vmem>>, vector<1x8x64xbf16>
    %17 = vector.shape_cast %16 : vector<1x8x64xbf16> to vector<8x64xbf16>
    %18 = arith.extf %17 : vector<8x64xbf16> to vector<8x64xf32>
    %c0_9 = arith.constant 0 : index
    %c0_10 = arith.constant 0 : index
    %19 = vector.load %arg7[%c0_9, %c0_10] : memref<16x64xf32, #tpu.memory_space<vmem>>, vector<16x64xf32>
    %c0_11 = arith.constant 0 : index
    %c0_12 = arith.constant 0 : index
    %c0_13 = arith.constant 0 : index
    %20 = vector.load %arg6[%c0_11, %c0_12, %c0_13] : memref<1x8x32xbf16, #tpu.memory_space<vmem>>, vector<1x8x32xbf16>
    %21 = vector.shape_cast %20 : vector<1x8x32xbf16> to vector<8x32xbf16>
    %22 = arith.extf %21 : vector<8x32xbf16> to vector<8x32xf32>
    %23 = vector.extract_strided_slice %22 {offsets = [0, 0], sizes = [8, 16], strides = [1, 1]} : vector<8x32xf32> to vector<8x16xf32>
    %24 = vector.extract_strided_slice %22 {offsets = [0, 16], sizes = [8, 16], strides = [1, 1]} : vector<8x32xf32> to vector<8x16xf32>
    %25 = vector.shape_cast %15 : vector<8x64xf32> to vector<8x1x64xf32>
    %26 = vector.shape_cast %19 : vector<16x64xf32> to vector<1x16x64xf32>
    %27 = vector.broadcast %25 : vector<8x1x64xf32> to vector<8x16x64xf32>
    %28 = vector.broadcast %26 : vector<1x16x64xf32> to vector<8x16x64xf32>
    %29 = arith.mulf %27, %28 : vector<8x16x64xf32>
    %30 = math.exp %29 : vector<8x16x64xf32>
    %c0_14 = arith.constant 0 : index
    %c0_15 = arith.constant 0 : index
    %c0_16 = arith.constant 0 : index
    %31 = vector.load %arg12[%c0_14, %c0_15, %c0_16] : memref<8x16x64xf32, #tpu.memory_space<vmem>>, vector<8x16x64xf32>
    tpu.vector_store %arg12[%c0_14, %c0_15, %c0_16], %30 {strides = array<i32>} : memref<8x16x64xf32, #tpu.memory_space<vmem>>, vector<8x16x64xf32>,
    %32 = arith.mulf %15, %18 : vector<8x64xf32>
    %33 = vector.shape_cast %32 : vector<8x64xf32> to vector<8x1x64xf32>
    %34 = vector.shape_cast %23 : vector<8x16xf32> to vector<8x16x1xf32>
    %35 = vector.broadcast %33 : vector<8x1x64xf32> to vector<8x16x64xf32>
    %36 = vector.broadcast %34 : vector<8x16x1xf32> to vector<8x16x64xf32>
    %37 = arith.mulf %35, %36 : vector<8x16x64xf32>
    %c0_17 = arith.constant 0 : index
    %c0_18 = arith.constant 0 : index
    %c0_19 = arith.constant 0 : index
    %38 = vector.load %arg13[%c0_17, %c0_18, %c0_19] : memref<8x16x64xf32, #tpu.memory_space<vmem>>, vector<8x16x64xf32>
    tpu.vector_store %arg13[%c0_17, %c0_18, %c0_19], %37 {strides = array<i32>} : memref<8x16x64xf32, #tpu.memory_space<vmem>>, vector<8x16x64xf32>,
    %c0_20 = arith.constant 0 : index
    %c0_21 = arith.constant 0 : index
    %39 = vector.load %arg11[%c0_20, %c0_21] : memref<16x64xf32, #tpu.memory_space<vmem>>, vector<16x64xf32>
    %c0_i32_22 = arith.constant 0 : i32
    %40 = arith.index_cast %c0_i32_22 : i32 to index
    %c0_23 = arith.constant 0 : index
    %c0_24 = arith.constant 0 : index
    %41 = vector.load %arg12[%40, %c0_23, %c0_24] : memref<8x16x64xf32, #tpu.memory_space<vmem>>, vector<1x16x64xf32>
    %42 = vector.shape_cast %41 : vector<1x16x64xf32> to vector<16x64xf32>
    %43 = arith.mulf %42, %39 : vector<16x64xf32>
    %44 = arith.index_cast %c0_i32_22 : i32 to index
    %c0_25 = arith.constant 0 : index
    %c0_26 = arith.constant 0 : index
    %45 = vector.load %arg13[%44, %c0_25, %c0_26] : memref<8x16x64xf32, #tpu.memory_space<vmem>>, vector<1x16x64xf32>
    %46 = vector.shape_cast %45 : vector<1x16x64xf32> to vector<16x64xf32>
    %47 = arith.addf %43, %46 : vector<16x64xf32>
    %48 = arith.index_cast %c0_i32_22 : i32 to index
    %c0_27 = arith.constant 0 : index
    %c0_28 = arith.constant 0 : index
    %49 = vector.load %arg13[%48, %c0_27, %c0_28] : memref<8x16x64xf32, #tpu.memory_space<vmem>>, vector<1x16x64xf32>
    %50 = vector.shape_cast %49 : vector<1x16x64xf32> to vector<16x64xf32>
    %51 = vector.shape_cast %47 : vector<16x64xf32> to vector<1x16x64xf32>
    tpu.vector_store %arg13[%48, %c0_27, %c0_28], %51 {strides = array<i32>} : memref<8x16x64xf32, #tpu.memory_space<vmem>>, vector<1x16x64xf32>,
    %c1_i32 = arith.constant 1 : i32
    %52 = arith.index_cast %c1_i32 : i32 to index
    %c0_29 = arith.constant 0 : index
    %c0_30 = arith.constant 0 : index
    %53 = vector.load %arg12[%52, %c0_29, %c0_30] : memref<8x16x64xf32, #tpu.memory_space<vmem>>, vector<1x16x64xf32>
    %54 = vector.shape_cast %53 : vector<1x16x64xf32> to vector<16x64xf32>
    %55 = arith.mulf %54, %47 : vector<16x64xf32>
    %56 = arith.index_cast %c1_i32 : i32 to index
    %c0_31 = arith.constant 0 : index
    %c0_32 = arith.constant 0 : index
    %57 = vector.load %arg13[%56, %c0_31, %c0_32] : memref<8x16x64xf32, #tpu.memory_space<vmem>>, vector<1x16x64xf32>
    %58 = vector.shape_cast %57 : vector<1x16x64xf32> to vector<16x64xf32>
    %59 = arith.addf %55, %58 : vector<16x64xf32>
    %60 = arith.index_cast %c1_i32 : i32 to index
    %c0_33 = arith.constant 0 : index
    %c0_34 = arith.constant 0 : index
    %61 = vector.load %arg13[%60, %c0_33, %c0_34] : memref<8x16x64xf32, #tpu.memory_space<vmem>>, vector<1x16x64xf32>
    %62 = vector.shape_cast %61 : vector<1x16x64xf32> to vector<16x64xf32>
    %63 = vector.shape_cast %59 : vector<16x64xf32> to vector<1x16x64xf32>
    tpu.vector_store %arg13[%60, %c0_33, %c0_34], %63 {strides = array<i32>} : memref<8x16x64xf32, #tpu.memory_space<vmem>>, vector<1x16x64xf32>,
    %c2_i32 = arith.constant 2 : i32
    %64 = arith.index_cast %c2_i32 : i32 to index
    %c0_35 = arith.constant 0 : index
    %c0_36 = arith.constant 0 : index
    %65 = vector.load %arg12[%64, %c0_35, %c0_36] : memref<8x16x64xf32, #tpu.memory_space<vmem>>, vector<1x16x64xf32>
    %66 = vector.shape_cast %65 : vector<1x16x64xf32> to vector<16x64xf32>
    %67 = arith.mulf %66, %59 : vector<16x64xf32>
    %68 = arith.index_cast %c2_i32 : i32 to index
    %c0_37 = arith.constant 0 : index
    %c0_38 = arith.constant 0 : index
    %69 = vector.load %arg13[%68, %c0_37, %c0_38] : memref<8x16x64xf32, #tpu.memory_space<vmem>>, vector<1x16x64xf32>
    %70 = vector.shape_cast %69 : vector<1x16x64xf32> to vector<16x64xf32>
    %71 = arith.addf %67, %70 : vector<16x64xf32>
    %72 = arith.index_cast %c2_i32 : i32 to index
    %c0_39 = arith.constant 0 : index
    %c0_40 = arith.constant 0 : index
    %73 = vector.load %arg13[%72, %c0_39, %c0_40] : memref<8x16x64xf32, #tpu.memory_space<vmem>>, vector<1x16x64xf32>
    %74 = vector.shape_cast %73 : vector<1x16x64xf32> to vector<16x64xf32>
    %75 = vector.shape_cast %71 : vector<16x64xf32> to vector<1x16x64xf32>
    tpu.vector_store %arg13[%72, %c0_39, %c0_40], %75 {strides = array<i32>} : memref<8x16x64xf32, #tpu.memory_space<vmem>>, vector<1x16x64xf32>,
    %c3_i32 = arith.constant 3 : i32
    %76 = arith.index_cast %c3_i32 : i32 to index
    %c0_41 = arith.constant 0 : index
    %c0_42 = arith.constant 0 : index
    %77 = vector.load %arg12[%76, %c0_41, %c0_42] : memref<8x16x64xf32, #tpu.memory_space<vmem>>, vector<1x16x64xf32>
    %78 = vector.shape_cast %77 : vector<1x16x64xf32> to vector<16x64xf32>
    %79 = arith.mulf %78, %71 : vector<16x64xf32>
    %80 = arith.index_cast %c3_i32 : i32 to index
    %c0_43 = arith.constant 0 : index
    %c0_44 = arith.constant 0 : index
    %81 = vector.load %arg13[%80, %c0_43, %c0_44] : memref<8x16x64xf32, #tpu.memory_space<vmem>>, vector<1x16x64xf32>
    %82 = vector.shape_cast %81 : vector<1x16x64xf32> to vector<16x64xf32>
    %83 = arith.addf %79, %82 : vector<16x64xf32>
    %84 = arith.index_cast %c3_i32 : i32 to index
    %c0_45 = arith.constant 0 : index
    %c0_46 = arith.constant 0 : index
    %85 = vector.load %arg13[%84, %c0_45, %c0_46] : memref<8x16x64xf32, #tpu.memory_space<vmem>>, vector<1x16x64xf32>
    %86 = vector.shape_cast %85 : vector<1x16x64xf32> to vector<16x64xf32>
    %87 = vector.shape_cast %83 : vector<16x64xf32> to vector<1x16x64xf32>
    tpu.vector_store %arg13[%84, %c0_45, %c0_46], %87 {strides = array<i32>} : memref<8x16x64xf32, #tpu.memory_space<vmem>>, vector<1x16x64xf32>,
    %c4_i32 = arith.constant 4 : i32
    %88 = arith.index_cast %c4_i32 : i32 to index
    %c0_47 = arith.constant 0 : index
    %c0_48 = arith.constant 0 : index
    %89 = vector.load %arg12[%88, %c0_47, %c0_48] : memref<8x16x64xf32, #tpu.memory_space<vmem>>, vector<1x16x64xf32>
    %90 = vector.shape_cast %89 : vector<1x16x64xf32> to vector<16x64xf32>
    %91 = arith.mulf %90, %83 : vector<16x64xf32>
    %92 = arith.index_cast %c4_i32 : i32 to index
    %c0_49 = arith.constant 0 : index
    %c0_50 = arith.constant 0 : index
    %93 = vector.load %arg13[%92, %c0_49, %c0_50] : memref<8x16x64xf32, #tpu.memory_space<vmem>>, vector<1x16x64xf32>
    %94 = vector.shape_cast %93 : vector<1x16x64xf32> to vector<16x64xf32>
    %95 = arith.addf %91, %94 : vector<16x64xf32>
    %96 = arith.index_cast %c4_i32 : i32 to index
    %c0_51 = arith.constant 0 : index
    %c0_52 = arith.constant 0 : index
    %97 = vector.load %arg13[%96, %c0_51, %c0_52] : memref<8x16x64xf32, #tpu.memory_space<vmem>>, vector<1x16x64xf32>
    %98 = vector.shape_cast %97 : vector<1x16x64xf32> to vector<16x64xf32>
    %99 = vector.shape_cast %95 : vector<16x64xf32> to vector<1x16x64xf32>
    tpu.vector_store %arg13[%96, %c0_51, %c0_52], %99 {strides = array<i32>} : memref<8x16x64xf32, #tpu.memory_space<vmem>>, vector<1x16x64xf32>,
    %c5_i32 = arith.constant 5 : i32
    %100 = arith.index_cast %c5_i32 : i32 to index
    %c0_53 = arith.constant 0 : index
    %c0_54 = arith.constant 0 : index
    %101 = vector.load %arg12[%100, %c0_53, %c0_54] : memref<8x16x64xf32, #tpu.memory_space<vmem>>, vector<1x16x64xf32>
    %102 = vector.shape_cast %101 : vector<1x16x64xf32> to vector<16x64xf32>
    %103 = arith.mulf %102, %95 : vector<16x64xf32>
    %104 = arith.index_cast %c5_i32 : i32 to index
    %c0_55 = arith.constant 0 : index
    %c0_56 = arith.constant 0 : index
    %105 = vector.load %arg13[%104, %c0_55, %c0_56] : memref<8x16x64xf32, #tpu.memory_space<vmem>>, vector<1x16x64xf32>
    %106 = vector.shape_cast %105 : vector<1x16x64xf32> to vector<16x64xf32>
    %107 = arith.addf %103, %106 : vector<16x64xf32>
    %108 = arith.index_cast %c5_i32 : i32 to index
    %c0_57 = arith.constant 0 : index
    %c0_58 = arith.constant 0 : index
    %109 = vector.load %arg13[%108, %c0_57, %c0_58] : memref<8x16x64xf32, #tpu.memory_space<vmem>>, vector<1x16x64xf32>
    %110 = vector.shape_cast %109 : vector<1x16x64xf32> to vector<16x64xf32>
    %111 = vector.shape_cast %107 : vector<16x64xf32> to vector<1x16x64xf32>
    tpu.vector_store %arg13[%108, %c0_57, %c0_58], %111 {strides = array<i32>} : memref<8x16x64xf32, #tpu.memory_space<vmem>>, vector<1x16x64xf32>,
    %c6_i32 = arith.constant 6 : i32
    %112 = arith.index_cast %c6_i32 : i32 to index
    %c0_59 = arith.constant 0 : index
    %c0_60 = arith.constant 0 : index
    %113 = vector.load %arg12[%112, %c0_59, %c0_60] : memref<8x16x64xf32, #tpu.memory_space<vmem>>, vector<1x16x64xf32>
    %114 = vector.shape_cast %113 : vector<1x16x64xf32> to vector<16x64xf32>
    %115 = arith.mulf %114, %107 : vector<16x64xf32>
    %116 = arith.index_cast %c6_i32 : i32 to index
    %c0_61 = arith.constant 0 : index
    %c0_62 = arith.constant 0 : index
    %117 = vector.load %arg13[%116, %c0_61, %c0_62] : memref<8x16x64xf32, #tpu.memory_space<vmem>>, vector<1x16x64xf32>
    %118 = vector.shape_cast %117 : vector<1x16x64xf32> to vector<16x64xf32>
    %119 = arith.addf %115, %118 : vector<16x64xf32>
    %120 = arith.index_cast %c6_i32 : i32 to index
    %c0_63 = arith.constant 0 : index
    %c0_64 = arith.constant 0 : index
    %121 = vector.load %arg13[%120, %c0_63, %c0_64] : memref<8x16x64xf32, #tpu.memory_space<vmem>>, vector<1x16x64xf32>
    %122 = vector.shape_cast %121 : vector<1x16x64xf32> to vector<16x64xf32>
    %123 = vector.shape_cast %119 : vector<16x64xf32> to vector<1x16x64xf32>
    tpu.vector_store %arg13[%120, %c0_63, %c0_64], %123 {strides = array<i32>} : memref<8x16x64xf32, #tpu.memory_space<vmem>>, vector<1x16x64xf32>,
    %c7_i32 = arith.constant 7 : i32
    %124 = arith.index_cast %c7_i32 : i32 to index
    %c0_65 = arith.constant 0 : index
    %c0_66 = arith.constant 0 : index
    %125 = vector.load %arg12[%124, %c0_65, %c0_66] : memref<8x16x64xf32, #tpu.memory_space<vmem>>, vector<1x16x64xf32>
    %126 = vector.shape_cast %125 : vector<1x16x64xf32> to vector<16x64xf32>
    %127 = arith.mulf %126, %119 : vector<16x64xf32>
    %128 = arith.index_cast %c7_i32 : i32 to index
    %c0_67 = arith.constant 0 : index
    %c0_68 = arith.constant 0 : index
    %129 = vector.load %arg13[%128, %c0_67, %c0_68] : memref<8x16x64xf32, #tpu.memory_space<vmem>>, vector<1x16x64xf32>
    %130 = vector.shape_cast %129 : vector<1x16x64xf32> to vector<16x64xf32>
    %131 = arith.addf %127, %130 : vector<16x64xf32>
    %132 = arith.index_cast %c7_i32 : i32 to index
    %c0_69 = arith.constant 0 : index
    %c0_70 = arith.constant 0 : index
    %133 = vector.load %arg13[%132, %c0_69, %c0_70] : memref<8x16x64xf32, #tpu.memory_space<vmem>>, vector<1x16x64xf32>
    %134 = vector.shape_cast %133 : vector<1x16x64xf32> to vector<16x64xf32>
    %135 = vector.shape_cast %131 : vector<16x64xf32> to vector<1x16x64xf32>
    tpu.vector_store %arg13[%132, %c0_69, %c0_70], %135 {strides = array<i32>} : memref<8x16x64xf32, #tpu.memory_space<vmem>>, vector<1x16x64xf32>,
    %c8_i32 = arith.constant 8 : i32
    %c0_71 = arith.constant 0 : index
    %c0_72 = arith.constant 0 : index
    %136 = vector.load %arg11[%c0_71, %c0_72] : memref<16x64xf32, #tpu.memory_space<vmem>>, vector<16x64xf32>
    tpu.vector_store %arg11[%c0_71, %c0_72], %131 {strides = array<i32>} : memref<16x64xf32, #tpu.memory_space<vmem>>, vector<16x64xf32>,
    %c0_73 = arith.constant 0 : index
    %c0_74 = arith.constant 0 : index
    %c0_75 = arith.constant 0 : index
    %137 = vector.load %arg13[%c0_73, %c0_74, %c0_75] : memref<8x16x64xf32, #tpu.memory_space<vmem>>, vector<8x16x64xf32>
    %138 = vector.shape_cast %24 : vector<8x16xf32> to vector<8x16x1xf32>
    %139 = vector.broadcast %138 : vector<8x16x1xf32> to vector<8x16x64xf32>
    %140 = arith.mulf %137, %139 : vector<8x16x64xf32>
    %cst_76 = arith.constant dense<0.000000e+00> : vector<8x64xf32>
    %141 = vector.multi_reduction <add>, %140, %cst_76 [1] : vector<8x16x64xf32> to vector<8x64xf32>
    %c0_77 = arith.constant 0 : index
    %c0_78 = arith.constant 0 : index
    %142 = vector.load %arg8[%c0_77, %c0_78] : memref<1x64xf32, #tpu.memory_space<vmem>>, vector<1x64xf32>
    %143 = vector.broadcast %142 : vector<1x64xf32> to vector<8x64xf32>
    %144 = arith.mulf %18, %143 : vector<8x64xf32>
    %145 = arith.addf %141, %144 : vector<8x64xf32>
    %c0_79 = arith.constant 0 : index
    %c0_80 = arith.constant 0 : index
    %c0_81 = arith.constant 0 : index
    %146 = vector.load %arg5[%c0_79, %c0_80, %c0_81] : memref<1x8x64xbf16, #tpu.memory_space<vmem>>, vector<1x8x64xbf16>
    %147 = vector.shape_cast %146 : vector<1x8x64xbf16> to vector<8x64xbf16>
    %148 = arith.extf %147 : vector<8x64xbf16> to vector<8x64xf32>
    %149 = arith.negf %148 : vector<8x64xf32>
    %150 = math.exp %149 : vector<8x64xf32>
    %cst_82 = arith.constant 1.000000e+00 : f32
    %151 = vector.broadcast %cst_82 : f32 to vector<8x64xf32>
    %152 = arith.addf %151, %150 : vector<8x64xf32>
    %153 = arith.divf %151, %152 : vector<8x64xf32>
    %154 = arith.mulf %148, %153 : vector<8x64xf32>
    %155 = arith.mulf %145, %154 : vector<8x64xf32>
    %156 = arith.truncf %155 : vector<8x64xf32> to vector<8x64xbf16>
    %c0_83 = arith.constant 0 : index
    %c0_84 = arith.constant 0 : index
    %c0_85 = arith.constant 0 : index
    %157 = vector.load %arg10[%c0_83, %c0_84, %c0_85] : memref<1x8x64xbf16, #tpu.memory_space<vmem>>, vector<1x8x64xbf16>
    %158 = vector.shape_cast %157 : vector<1x8x64xbf16> to vector<8x64xbf16>
    %159 = vector.shape_cast %156 : vector<8x64xbf16> to vector<1x8x64xbf16>
    tpu.vector_store %arg10[%c0_83, %c0_84, %c0_85], %159 {strides = array<i32>} : memref<1x8x64xbf16, #tpu.memory_space<vmem>>, vector<1x8x64xbf16>,
    return
  }
  func.func @transform_0(%arg0: i32, %arg1: i32, %arg2: i32) -> (i32, i32, i32) {
    %c0_i32 = arith.constant 0 : i32
    return %arg0, %arg2, %arg1 : i32, i32, i32
  }
  func.func @transform_1(%arg0: i32, %arg1: i32, %arg2: i32) -> (i32, i32, i32) {
    %c0_i32 = arith.constant 0 : i32
    return %arg0, %arg2, %arg1 : i32, i32, i32
  }
  func.func @transform_2(%arg0: i32, %arg1: i32, %arg2: i32) -> (i32, i32, i32) {
    %c0_i32 = arith.constant 0 : i32
    return %arg0, %arg2, %arg1 : i32, i32, i32
  }
  func.func @transform_3(%arg0: i32, %arg1: i32, %arg2: i32) -> (i32, i32, i32) {
    %c0_i32 = arith.constant 0 : i32
    %c0_i32_0 = arith.constant 0 : i32
    return %arg0, %arg2, %c0_i32 : i32, i32, i32
  }
  func.func @transform_4(%arg0: i32, %arg1: i32, %arg2: i32) -> (i32, i32) {
    %c0_i32 = arith.constant 0 : i32
    %c0_i32_0 = arith.constant 0 : i32
    return %c0_i32, %arg1 : i32, i32
  }
  func.func @transform_5(%arg0: i32, %arg1: i32, %arg2: i32) -> (i32, i32) {
    %c0_i32 = arith.constant 0 : i32
    %c0_i32_0 = arith.constant 0 : i32
    return %c0_i32, %arg1 : i32, i32
  }
  func.func @transform_6(%arg0: i32, %arg1: i32, %arg2: i32) -> (i32, i32) {
    %c0_i32 = arith.constant 0 : i32
    %c0_i32_0 = arith.constant 0 : i32
    return %c0_i32, %arg1 : i32, i32
  }
  func.func @transform_7(%arg0: i32, %arg1: i32, %arg2: i32) -> (i32, i32, i32) {
    %c0_i32 = arith.constant 0 : i32
    return %arg0, %arg2, %arg1 : i32, i32, i32
  }
}

module attributes {stable_mosaic.version = 11 : i64} {
  func.func @_matmul2d_kernel(%arg0: i32, %arg1: memref<16x64xbf16, #tpu.memory_space<vmem>>, %arg2: memref<64x32xbf16, #tpu.memory_space<vmem>>, %arg3: memref<16x32xbf16, #tpu.memory_space<vmem>>) attributes {dimension_semantics = [#tpu.dimension_semantics<parallel>], iteration_bounds = array<i64: 1>, scalar_prefetch = 0 : i64, scratch_operands = 0 : i64, tpu.core_type = #tpu.core_type<tc>, window_params = [{transform_indices = @transform_0, window_bounds = array<i64: 16, 64>}, {pipeline_mode = #tpu.pipeline_mode<synchronous>, transform_indices = @transform_1, window_bounds = array<i64: 64, 32>}, {transform_indices = @transform_2, window_bounds = array<i64: 16, 32>}]} {
    %c0 = arith.constant 0 : index
    %c0_0 = arith.constant 0 : index
    %0 = vector.load %arg1[%c0, %c0_0] : memref<16x64xbf16, #tpu.memory_space<vmem>>, vector<16x64xbf16>
    %c0_1 = arith.constant 0 : index
    %c0_2 = arith.constant 0 : index
    %1 = vector.load %arg2[%c0_1, %c0_2] : memref<64x32xbf16, #tpu.memory_space<vmem>>, vector<64x32xbf16>
    %cst = arith.constant dense<0.000000e+00> : vector<16x32xf32>
    %2 = tpu.matmul %0, %1, %cst {dimension_numbers = #tpu.dot_dimension_numbers<[1], [0], [0], [1], [0, 0, 1, 1], [], []>} : vector<16x64xbf16>, vector<64x32xbf16>, vector<16x32xf32> -> vector<16x32xf32>
    %3 = arith.truncf %2 : vector<16x32xf32> to vector<16x32xbf16>
    %c0_3 = arith.constant 0 : index
    %c0_4 = arith.constant 0 : index
    %4 = vector.load %arg3[%c0_3, %c0_4] : memref<16x32xbf16, #tpu.memory_space<vmem>>, vector<16x32xbf16>
    tpu.vector_store %arg3[%c0_3, %c0_4], %3 {strides = array<i32>} : memref<16x32xbf16, #tpu.memory_space<vmem>>, vector<16x32xbf16>,
    return
  }
  func.func @transform_0(%arg0: i32) -> (i32, i32) {
    %c0_i32 = arith.constant 0 : i32
    %c0_i32_0 = arith.constant 0 : i32
    return %arg0, %c0_i32 : i32, i32
  }
  func.func @transform_1(%arg0: i32) -> (i32, i32) {
    %c0_i32 = arith.constant 0 : i32
    %c0_i32_0 = arith.constant 0 : i32
    %c0_i32_1 = arith.constant 0 : i32
    return %c0_i32, %c0_i32_0 : i32, i32
  }
  func.func @transform_2(%arg0: i32) -> (i32, i32) {
    %c0_i32 = arith.constant 0 : i32
    %c0_i32_0 = arith.constant 0 : i32
    return %arg0, %c0_i32 : i32, i32
  }
}

module attributes {stable_mosaic.version = 11 : i64} {
  func.func @_norm_inproj_kernel(%arg0: i32, %arg1: memref<16x32xbf16, #tpu.memory_space<vmem>>, %arg2: memref<16x32xf32, #tpu.memory_space<vmem>>, %arg3: memref<1x32xf32, #tpu.memory_space<vmem>>, %arg4: memref<32x64xbf16, #tpu.memory_space<vmem>>, %arg5: memref<32x64xbf16, #tpu.memory_space<vmem>>, %arg6: memref<16x64xbf16, #tpu.memory_space<vmem>>, %arg7: memref<16x64xbf16, #tpu.memory_space<vmem>>, %arg8: memref<16x32xf32, #tpu.memory_space<vmem>>) attributes {dimension_semantics = [#tpu.dimension_semantics<parallel>], iteration_bounds = array<i64: 1>, scalar_prefetch = 0 : i64, scratch_operands = 0 : i64, tpu.core_type = #tpu.core_type<tc>, window_params = [{transform_indices = @transform_0, window_bounds = array<i64: 16, 32>}, {transform_indices = @transform_1, window_bounds = array<i64: 16, 32>}, {pipeline_mode = #tpu.pipeline_mode<synchronous>, transform_indices = @transform_2, window_bounds = array<i64: 1, 32>}, {pipeline_mode = #tpu.pipeline_mode<synchronous>, transform_indices = @transform_3, window_bounds = array<i64: 32, 64>}, {pipeline_mode = #tpu.pipeline_mode<synchronous>, transform_indices = @transform_4, window_bounds = array<i64: 32, 64>}, {transform_indices = @transform_5, window_bounds = array<i64: 16, 64>}, {transform_indices = @transform_6, window_bounds = array<i64: 16, 64>}, {transform_indices = @transform_7, window_bounds = array<i64: 16, 32>}]} {
    %c0 = arith.constant 0 : index
    %c0_0 = arith.constant 0 : index
    %0 = vector.load %arg1[%c0, %c0_0] : memref<16x32xbf16, #tpu.memory_space<vmem>>, vector<16x32xbf16>
    %1 = arith.extf %0 : vector<16x32xbf16> to vector<16x32xf32>
    %c0_1 = arith.constant 0 : index
    %c0_2 = arith.constant 0 : index
    %2 = vector.load %arg2[%c0_1, %c0_2] : memref<16x32xf32, #tpu.memory_space<vmem>>, vector<16x32xf32>
    %3 = arith.addf %1, %2 : vector<16x32xf32>
    %c0_3 = arith.constant 0 : index
    %c0_4 = arith.constant 0 : index
    %4 = vector.load %arg8[%c0_3, %c0_4] : memref<16x32xf32, #tpu.memory_space<vmem>>, vector<16x32xf32>
    tpu.vector_store %arg8[%c0_3, %c0_4], %3 {strides = array<i32>} : memref<16x32xf32, #tpu.memory_space<vmem>>, vector<16x32xf32>,
    %5 = arith.mulf %3, %3 : vector<16x32xf32>
    %cst = arith.constant dense<0.000000e+00> : vector<16xf32>
    %6 = vector.multi_reduction <add>, %5, %cst [1] : vector<16x32xf32> to vector<16xf32>
    %7 = vector.shape_cast %6 : vector<16xf32> to vector<16x1xf32>
    %cst_5 = arith.constant 3.200000e+01 : f32
    %8 = vector.broadcast %cst_5 : f32 to vector<16x1xf32>
    %9 = arith.divf %7, %8 : vector<16x1xf32>
    %cst_6 = arith.constant 9.99999974E-6 : f32
    %10 = vector.broadcast %cst_6 : f32 to vector<16x1xf32>
    %11 = arith.addf %9, %10 : vector<16x1xf32>
    %12 = math.rsqrt %11 : vector<16x1xf32>
    %13 = vector.broadcast %12 : vector<16x1xf32> to vector<16x32xf32>
    %14 = arith.mulf %3, %13 : vector<16x32xf32>
    %c0_7 = arith.constant 0 : index
    %c0_8 = arith.constant 0 : index
    %15 = vector.load %arg3[%c0_7, %c0_8] : memref<1x32xf32, #tpu.memory_space<vmem>>, vector<1x32xf32>
    %16 = vector.broadcast %15 : vector<1x32xf32> to vector<16x32xf32>
    %17 = arith.mulf %14, %16 : vector<16x32xf32>
    %18 = arith.truncf %17 : vector<16x32xf32> to vector<16x32xbf16>
    %c0_9 = arith.constant 0 : index
    %c0_10 = arith.constant 0 : index
    %19 = vector.load %arg4[%c0_9, %c0_10] : memref<32x64xbf16, #tpu.memory_space<vmem>>, vector<32x64xbf16>
    %cst_11 = arith.constant dense<0.000000e+00> : vector<16x64xf32>
    %20 = tpu.matmul %18, %19, %cst_11 {dimension_numbers = #tpu.dot_dimension_numbers<[1], [0], [0], [1], [0, 0, 1, 1], [], []>} : vector<16x32xbf16>, vector<32x64xbf16>, vector<16x64xf32> -> vector<16x64xf32>
    %21 = arith.truncf %20 : vector<16x64xf32> to vector<16x64xbf16>
    %c0_12 = arith.constant 0 : index
    %c0_13 = arith.constant 0 : index
    %22 = vector.load %arg6[%c0_12, %c0_13] : memref<16x64xbf16, #tpu.memory_space<vmem>>, vector<16x64xbf16>
    tpu.vector_store %arg6[%c0_12, %c0_13], %21 {strides = array<i32>} : memref<16x64xbf16, #tpu.memory_space<vmem>>, vector<16x64xbf16>,
    %c0_14 = arith.constant 0 : index
    %c0_15 = arith.constant 0 : index
    %23 = vector.load %arg5[%c0_14, %c0_15] : memref<32x64xbf16, #tpu.memory_space<vmem>>, vector<32x64xbf16>
    %cst_16 = arith.constant dense<0.000000e+00> : vector<16x64xf32>
    %24 = tpu.matmul %18, %23, %cst_16 {dimension_numbers = #tpu.dot_dimension_numbers<[1], [0], [0], [1], [0, 0, 1, 1], [], []>} : vector<16x32xbf16>, vector<32x64xbf16>, vector<16x64xf32> -> vector<16x64xf32>
    %25 = arith.truncf %24 : vector<16x64xf32> to vector<16x64xbf16>
    %c0_17 = arith.constant 0 : index
    %c0_18 = arith.constant 0 : index
    %26 = vector.load %arg7[%c0_17, %c0_18] : memref<16x64xbf16, #tpu.memory_space<vmem>>, vector<16x64xbf16>
    tpu.vector_store %arg7[%c0_17, %c0_18], %25 {strides = array<i32>} : memref<16x64xbf16, #tpu.memory_space<vmem>>, vector<16x64xbf16>,
    return
  }
  func.func @transform_0(%arg0: i32) -> (i32, i32) {
    %c0_i32 = arith.constant 0 : i32
    %c0_i32_0 = arith.constant 0 : i32
    return %arg0, %c0_i32 : i32, i32
  }
  func.func @transform_1(%arg0: i32) -> (i32, i32) {
    %c0_i32 = arith.constant 0 : i32
    %c0_i32_0 = arith.constant 0 : i32
    return %arg0, %c0_i32 : i32, i32
  }
  func.func @transform_2(%arg0: i32) -> (i32, i32) {
    %c0_i32 = arith.constant 0 : i32
    %c0_i32_0 = arith.constant 0 : i32
    %c0_i32_1 = arith.constant 0 : i32
    return %c0_i32, %c0_i32_0 : i32, i32
  }
  func.func @transform_3(%arg0: i32) -> (i32, i32) {
    %c0_i32 = arith.constant 0 : i32
    %c0_i32_0 = arith.constant 0 : i32
    %c0_i32_1 = arith.constant 0 : i32
    return %c0_i32, %c0_i32_0 : i32, i32
  }
  func.func @transform_4(%arg0: i32) -> (i32, i32) {
    %c0_i32 = arith.constant 0 : i32
    %c0_i32_0 = arith.constant 0 : i32
    %c0_i32_1 = arith.constant 0 : i32
    return %c0_i32, %c0_i32_0 : i32, i32
  }
  func.func @transform_5(%arg0: i32) -> (i32, i32) {
    %c0_i32 = arith.constant 0 : i32
    %c0_i32_0 = arith.constant 0 : i32
    return %arg0, %c0_i32 : i32, i32
  }
  func.func @transform_6(%arg0: i32) -> (i32, i32) {
    %c0_i32 = arith.constant 0 : i32
    %c0_i32_0 = arith.constant 0 : i32
    return %arg0, %c0_i32 : i32, i32
  }
  func.func @transform_7(%arg0: i32) -> (i32, i32) {
    %c0_i32 = arith.constant 0 : i32
    %c0_i32_0 = arith.constant 0 : i32
    return %arg0, %c0_i32 : i32, i32
  }
}

module attributes {stable_mosaic.version = 11 : i64} {
  func.func @_add_rmsnorm_kernel(%arg0: i32, %arg1: memref<16x32xbf16, #tpu.memory_space<vmem>>, %arg2: memref<16x32xf32, #tpu.memory_space<vmem>>, %arg3: memref<1x32xf32, #tpu.memory_space<vmem>>, %arg4: memref<16x32xf32, #tpu.memory_space<vmem>>, %arg5: memref<16x32xf32, #tpu.memory_space<vmem>>) attributes {dimension_semantics = [#tpu.dimension_semantics<parallel>], iteration_bounds = array<i64: 1>, scalar_prefetch = 0 : i64, scratch_operands = 0 : i64, tpu.core_type = #tpu.core_type<tc>, window_params = [{transform_indices = @transform_0, window_bounds = array<i64: 16, 32>}, {transform_indices = @transform_1, window_bounds = array<i64: 16, 32>}, {pipeline_mode = #tpu.pipeline_mode<synchronous>, transform_indices = @transform_2, window_bounds = array<i64: 1, 32>}, {transform_indices = @transform_3, window_bounds = array<i64: 16, 32>}, {transform_indices = @transform_4, window_bounds = array<i64: 16, 32>}]} {
    %c0 = arith.constant 0 : index
    %c0_0 = arith.constant 0 : index
    %0 = vector.load %arg1[%c0, %c0_0] : memref<16x32xbf16, #tpu.memory_space<vmem>>, vector<16x32xbf16>
    %1 = arith.extf %0 : vector<16x32xbf16> to vector<16x32xf32>
    %c0_1 = arith.constant 0 : index
    %c0_2 = arith.constant 0 : index
    %2 = vector.load %arg2[%c0_1, %c0_2] : memref<16x32xf32, #tpu.memory_space<vmem>>, vector<16x32xf32>
    %3 = arith.addf %1, %2 : vector<16x32xf32>
    %c0_3 = arith.constant 0 : index
    %c0_4 = arith.constant 0 : index
    %4 = vector.load %arg5[%c0_3, %c0_4] : memref<16x32xf32, #tpu.memory_space<vmem>>, vector<16x32xf32>
    tpu.vector_store %arg5[%c0_3, %c0_4], %3 {strides = array<i32>} : memref<16x32xf32, #tpu.memory_space<vmem>>, vector<16x32xf32>,
    %5 = arith.mulf %3, %3 : vector<16x32xf32>
    %cst = arith.constant dense<0.000000e+00> : vector<16xf32>
    %6 = vector.multi_reduction <add>, %5, %cst [1] : vector<16x32xf32> to vector<16xf32>
    %7 = vector.shape_cast %6 : vector<16xf32> to vector<16x1xf32>
    %cst_5 = arith.constant 3.200000e+01 : f32
    %8 = vector.broadcast %cst_5 : f32 to vector<16x1xf32>
    %9 = arith.divf %7, %8 : vector<16x1xf32>
    %cst_6 = arith.constant 9.99999974E-6 : f32
    %10 = vector.broadcast %cst_6 : f32 to vector<16x1xf32>
    %11 = arith.addf %9, %10 : vector<16x1xf32>
    %12 = math.rsqrt %11 : vector<16x1xf32>
    %13 = vector.broadcast %12 : vector<16x1xf32> to vector<16x32xf32>
    %14 = arith.mulf %3, %13 : vector<16x32xf32>
    %c0_7 = arith.constant 0 : index
    %c0_8 = arith.constant 0 : index
    %15 = vector.load %arg3[%c0_7, %c0_8] : memref<1x32xf32, #tpu.memory_space<vmem>>, vector<1x32xf32>
    %16 = vector.broadcast %15 : vector<1x32xf32> to vector<16x32xf32>
    %17 = arith.mulf %14, %16 : vector<16x32xf32>
    %c0_9 = arith.constant 0 : index
    %c0_10 = arith.constant 0 : index
    %18 = vector.load %arg4[%c0_9, %c0_10] : memref<16x32xf32, #tpu.memory_space<vmem>>, vector<16x32xf32>
    tpu.vector_store %arg4[%c0_9, %c0_10], %17 {strides = array<i32>} : memref<16x32xf32, #tpu.memory_space<vmem>>, vector<16x32xf32>,
    return
  }
  func.func @transform_0(%arg0: i32) -> (i32, i32) {
    %c0_i32 = arith.constant 0 : i32
    %c0_i32_0 = arith.constant 0 : i32
    return %arg0, %c0_i32 : i32, i32
  }
  func.func @transform_1(%arg0: i32) -> (i32, i32) {
    %c0_i32 = arith.constant 0 : i32
    %c0_i32_0 = arith.constant 0 : i32
    return %arg0, %c0_i32 : i32, i32
  }
  func.func @transform_2(%arg0: i32) -> (i32, i32) {
    %c0_i32 = arith.constant 0 : i32
    %c0_i32_0 = arith.constant 0 : i32
    %c0_i32_1 = arith.constant 0 : i32
    return %c0_i32, %c0_i32_0 : i32, i32
  }
  func.func @transform_3(%arg0: i32) -> (i32, i32) {
    %c0_i32 = arith.constant 0 : i32
    %c0_i32_0 = arith.constant 0 : i32
    return %arg0, %c0_i32 : i32, i32
  }
  func.func @transform_4(%arg0: i32) -> (i32, i32) {
    %c0_i32 = arith.constant 0 : i32
    %c0_i32_0 = arith.constant 0 : i32
    return %arg0, %c0_i32 : i32, i32
  }
}

</mosaic_0001>

<bundles_post_ra>
// kernel: dna_embedding_mamba_forward.13
= control target key start
LH: loop header
LB: loop body
LE: loop exit
PB: predicated region body
PF: predicated region fallthrough
CT: control target
= control target key end

     0   :  { %vm56_vm0 = vcmask 523264   ;;  %vm80_vm1 = vcmask 1040384   ;;  %s152_s27 = smov 126   ;;  %vm76_vm2 = vcmask 15360   ;;  %vm113_vm3 = vcmask 257024   ;;  %s208_s1 = inlined_call_operand.vmem [shape: bf16[64,34], index: 1, kind: input, shape index: {}]   ;;  %s209_s0 = inlined_call_operand.vmem [shape: bf16[16,64], index: 0, kind: input, shape index: {}]   ;;  %s210_s2 = inlined_call_operand.vmem [shape: bf16[2,64], index: 2, kind: input, shape index: {}]   ;;  %s211_s4 = inlined_call_operand.vmem [shape: bf16[16,32], index: 4, kind: output, shape index: {1}]   ;;  %s212_s3 = inlined_call_operand.vmem [shape: bf16[16,64], index: 3, kind: output, shape index: {0}]  }
   0x1   :  { %v150_v0 = vld [vmem:[%s208_s1 + $0x18] sm:$0xff]  ;;  %v149_v1 = vld [vmem:[%s208_s1 + $0x10] sm:$0xff]  ;;  %v148_v2 = vld [vmem:[%s208_s1 + $0x8] sm:$0xff]  ;;  %vm100_vm4 = vcmask 519168  }
   0x2   :  { %64 = vmatpush.bf16.msra.mxu0 %v150_v0  ;;  %v147_v3 = vld [vmem:[%s208_s1] sm:$0xff] }
   0x3   :  { %v146_v4 = vld [vmem:[%s209_s0] sm:$0xff] }
   0x4   :  { %v75_v5 = vld [vmem:[%s210_s2] sm:$0x1] }
   0x5   :  { %v82_v6 = vsel %vm80_vm1, %v75_v5, 0 }
   0x6   :  { %65 = vmatpush.bf16.msra.mxu0 %v149_v1  ;;  %91 = vmatpush.bf16.msra.mxu1 %v82_v6 }
   0xa   :  { %66 = vmatpush.bf16.msra.mxu0 %v148_v2 }
   0xe   :  { %67 = vmatpush.bf16.msra.mxu0 %v147_v3 }
  0x11   :  { %144 = vmatmul.msk.bf16.vlgmr.msra.gmra.mxu0 %vm56_vm0, %v146_v4 }
  0x8e   :  { %v69_v7 = vpop.f32.mrf.mxu0 }
  0x8f   :  { %v103_v8 = vpack.c.bf16 %v69_v7, %v69_v7 }
  0x91   :  { %107 = vrot.lane.b32.xlu0 %v103_v8, %s152_s27 }
  0x96   :  { %v71_v9 = vpop.f32.mrf.mxu0 }
  0x97   :  { %v74_v10 = vpack.c.bf16 %v71_v9, %v69_v7  ;;  %v104_v11 = vpack.c.bf16 %v71_v9, %v71_v9 }
  0x99   :  { %109 = vrot.lane.b32.xlu0 %v104_v11, %s152_s27  ;;  %145 = vmatmul.msk.bf16.vlgmr.msra.gmra.mxu1 %vm76_vm2, %v74_v10 }
 0x103   :  { %v108_v12 = vpop.permute.xlu0 %107 }
 0x104   :  { %114 = vst.msk [vmem:[%s211_s4] sm:$0xf] %vm113_vm3, %v108_v12 }
 0x10b   :  { %v110_v13 = vpop.permute.xlu0 %109 }
 0x10c   :  { %115 = vst.msk [vmem:[%s211_s4 + $0x4] sm:$0xf] %vm113_vm3, %v110_v13 }
 0x116   :  { %v93_v14 = vpop.f32.mrf.mxu1 }
 0x117   :  { %v98_v15 = vpack.c.bf16 %v93_v14, %v93_v14 }
 0x119   :  { %101 = vst.msk [vmem:[%s212_s3] sm:$0xf] %vm100_vm4, %v98_v15 }
 0x11e   :  { %v95_v16 = vpop.f32.mrf.mxu1 }
 0x11f   :  { %v99_v17 = vpack.c.bf16 %v95_v16, %v95_v16 }
 0x121   :  { %102 = vst.msk [vmem:[%s212_s3 + $0x4] sm:$0xf] %vm100_vm4, %v99_v17 }

// kernel: dna_embedding_mamba_forward.12
= control target key start
LH: loop header
LB: loop body
LE: loop exit
PB: predicated region body
PF: predicated region fallthrough
CT: control target
= control target key end

     0   :  { %s517_s12 = smov 0   ;;  %s519_s13 = smov 0   ;;  %s569_s0 = inlined_call_operand.vmem [shape: bf16[2,8,64], index: 0, kind: input, shape index: {}]   ;;  %s570_s1 = inlined_call_operand.vmem [shape: bf16[4,64], index: 1, kind: input, shape index: {}]   ;;  %s571_s2 = inlined_call_operand.vmem [shape: f32[1,64], index: 2, kind: input, shape index: {}]   ;;  %s572_s3 = inlined_call_operand.vmem [shape: bf16[2,8,64], index: 3, kind: output, shape index: {}]  }
   0x1   :  { %s521_s14 = smov 0  }
   0x2 LB: > { %s32_s15 = sadd.s32 1, %s490_s13  ;;  %p436_p0 = scmp.ge.s32.totalorder %s494_s14, 1  ;;  %s494_s14 = sphi %s521_s14, %s13_s14   ;;  %s490_s13 = sphi %s519_s13, %s574_s13   ;;  %s486_s12 = sphi %s517_s12, %s573_s12  }
   0x3   : > { %p34_p1 = scmp.ge.s32.totalorder %s32_s15, 2  ;;  %p186_p2 = scmp.lt.s32.totalorder %s494_s14, 3 }
   0x5   : > { %s576_s15 = smov (%p34_p1, %s32_s15), 0  ;;  %p187_p3 = pnand %p436_p0, %p186_p2 }
   0x6   : > { %p227_p4 = scmp.lt.s32.totalorder (!%p187_p3), %s486_s12, 1 }
   0x7   : > { %190 = sbr.rel (%p187_p3) target bundleno = 69 (0x45), region = 32 }
   0xc   : > { %vm258_vm0 = vcmask 523264   ;;  %v496_v0 = vmov 0.0   ;;  %s578_s12 = smov (!%p227_p4, %s486_s12), 1  ;;  %v268_v2 = vld [vmem:[%s570_s1] sm:$0x1]  ;;  %vm308_vm5 = vcmask 519168  }
   0xd   : > { %259 = vst.msk [vmem:[#allocation2] sm:$0xff] %vm258_vm0, %v496_v0  ;;  %s437_s16 = sshll.u32 %s578_s12, 2  ;;  %v269_v4 = vunpack.c.l.bf16 %v268_v2  ;;  %v278_v5 = vld [vmem:[%s570_s1] sm:$0x2]  ;;  %v467_v8 = vld [vmem:[%s571_s2] ss:$0 sm:$0xff] }
   0xe   : > { %s236_s19 = scalar_lea.vmem %s569_s0, %s437_s16  ;;  %v279_v7 = vunpack.c.l.bf16 %v278_v5  ;;  %s253_s28 = scalar_lea.vmem %s572_s3, %s437_s16 }
   0xf   : > { %v260_v1 = vld [vmem:[%s236_s19] sm:$0xf]  ;;  %v271_v6 = vperm.slane %v269_v4, 0  ;;  %v275_v9 = vperm.slane %v269_v4, 1 }
  0x10   : > { %v261_v3 = vunpack.c.l.bf16 %v260_v1  ;;  %v281_v14 = vperm.slane %v279_v7, 2  ;;  %v284_v15 = vperm.slane %v279_v7, 3 }
  0x12   : > { %263 = vst.msk [vmem:[#allocation2 + $0x8] sm:$0xff] %vm258_vm0, %v261_v3  ;;  %v285_v21 = vmul.f32 %v284_v15, %v261_v3 }
  0x19   : > { %v270_v10 = vld [vmem:[#allocation2 + $0x5] sm:$0xff] }
  0x1a   : > { %v274_v11 = vld [vmem:[#allocation2 + $0x6] sm:$0xff]  ;;  %v272_v13 = vmul.f32 %v271_v6, %v270_v10 }
  0x1b   : > { %v280_v12 = vld [vmem:[#allocation2 + $0x7] sm:$0xff]  ;;  %v276_v18 = vmul.f32 %v275_v9, %v274_v11 }
  0x1c   : > { %v310_v16 = vld [vmem:[#allocation2 + $0x8] sm:$0xff]  ;;  %v273_v17 = vadd.f32 %v467_v8, %v272_v13  ;;  %v282_v20 = vmul.f32 %v281_v14, %v280_v12 }
  0x1d   : > { %311 = vst.msk [vmem:[#allocation2] sm:$0xff] %vm258_vm0, %v310_v16 }
  0x1e   : > { %v277_v19 = vadd.f32 %v276_v18, %v273_v17 }
  0x20   : > { %v283_v22 = vadd.f32 %v282_v20, %v277_v19 }
  0x22   : > { %v286_v23 = vadd.f32 %v285_v21, %v283_v22 }
  0x24   : > { %v439_v24 = vmul.f32 -1.442695, %v286_v23 }
  0x26   : > { %468 = vpow2.f32 %v439_v24 }
  0x2c   : > { %v469_v25 = vpop.eup %468 }
  0x2d   : > { %v290_v26 = vadd.f32 1.0, %v469_v25 }
  0x2f   : > { %470 = vrcp.f32 %v290_v26  ;;  %v302_v30 = vand.u32 2147483648, %v290_v26  ;;  %v300_v32 = vand.u32 2147483647, %v290_v26  ;;  %vm296_vm2 = vweird.f32 %v290_v26 }
  0x31   : > { %v303_v34 = vor.u32 1.1754944e-38, %v302_v30  ;;  %vm301_vm4 = vcmp.eq.f32.partialorder %v300_v32, 8.507059e+37 }
  0x35   : > { %v471_v27 = vpop.eup %470 }
  0x36   : > { %v292_v28 = vmul.f32 %v471_v27, %v290_v26  ;;  %vm297_vm1 = vweird.f32 %v471_v27 }
  0x37   : > { %vm298_vm3 = vmor %vm296_vm2, %vm297_vm1 }
  0x38   : > { %v293_v29 = vsub.f32 1.0, %v292_v28 }
  0x3a   : > { %v294_v31 = vmul.f32 %v471_v27, %v293_v29 }
  0x3c   : > { %v295_v33 = vadd.f32 %v471_v27, %v294_v31 }
  0x3e   : > { %v299_v35 = vsel %vm298_vm3, %v471_v27, %v295_v33 }
  0x3f   : > { %v304_v36 = vsel %vm301_vm4, %v303_v34, %v299_v35 }
  0x40   : > { %v306_v37 = vmul.f32 %v304_v36, %v286_v23 }
  0x42   : > { %v307_v38 = vpack.c.bf16 %v306_v37, %v306_v37 }
  0x44   : > { %309 = vst.msk [vmem:[%s253_s28] sm:$0xf] %vm308_vm5, %v307_v38 }
  0x45 PF: > { %s13_s14 = sadd.s32 1, %s494_s14   ;;  %s573_s12 = smov %s490_s13 }
  0x46   : > { %p10_p5 = scmp.ge.s32.totalorder %s13_s14, 4   ;;  %s574_s13 = smov %s576_s15 }
  0x48   :  { %12 = sbr.rel (!%p10_p5) target bundleno = 2 (0x2), region = 72 }

// kernel: dna_embedding_mamba_forward.11
= control target key start
LH: loop header
LB: loop body
LE: loop exit
PB: predicated region body
PF: predicated region fallthrough
CT: control target
= control target key end

     0   :  { %vm30_vm0 = vcmask 261120   ;;  %v195_v10 = vmov 32.0   ;;  %vm116_vm8 = vcmask 519168   ;;  %s287_s0 = inlined_call_operand.vmem [shape: f32[16,32], index: 0, kind: input, shape index: {}]   ;;  %s288_s1 = inlined_call_operand.vmem [shape: f32[16,32], index: 1, kind: input, shape index: {}, may-alias: {1,7}]   ;;  %s289_s7 = inlined_call_operand.vmem [shape: f32[16,32], index: 7, kind: output, shape index: {2}, may-alias: {1,7}]   ;;  %s290_s2 = inlined_call_operand.vmem [shape: f32[1,32], index: 2, kind: input, shape index: {}]   ;;  %s291_s3 = inlined_call_operand.vmem [shape: bf16[32,64], index: 3, kind: input, shape index: {}]   ;;  %s292_s4 = inlined_call_operand.vmem [shape: bf16[32,64], index: 4, kind: input, shape index: {}]   ;;  %s293_s5 = inlined_call_operand.vmem [shape: bf16[16,64], index: 5, kind: output, shape index: {0}]   ;;  %s294_s6 = inlined_call_operand.vmem [shape: bf16[16,64], index: 6, kind: output, shape index: {1}]  }
   0x1   :  { %v24_v0 = vld [vmem:[%s287_s0] sm:$0xff]  ;;  %v25_v2 = vld [vmem:[%s287_s0 + $0x8] sm:$0xff]  ;;  %189 = vrcp.f32 %v195_v10 }
   0x2   :  { %v26_v1 = vld [vmem:[%s288_s1] sm:$0xff]  ;;  %v27_v4 = vld [vmem:[%s288_s1 + $0x8] sm:$0xff] }
   0x3   :  { %v28_v3 = vadd.f32 %v26_v1, %v24_v0  ;;  %v29_v5 = vadd.f32 %v27_v4, %v25_v2  ;;  %v184_v16 = vld [vmem:[%s291_s3 + $0x8] sm:$0xff]  ;;  %v183_v19 = vld [vmem:[%s291_s3] sm:$0xff] }
   0x4   :  { %v186_v17 = vld [vmem:[%s292_s4 + $0x8] sm:$0xff]  ;;  %106 = vmatpush.bf16.msra.mxu0 %v184_v16  ;;  %v185_v20 = vld [vmem:[%s292_s4] sm:$0xff] }
   0x5   :  { %v33_v6 = vmul.f32 %v28_v3, %v28_v3  ;;  %31 = vst.msk [vmem:[%s289_s7] sm:$0xff] %vm30_vm0, %v28_v3  ;;  %v34_v8 = vmul.f32 %v29_v5, %v29_v5  ;;  %141 = vmatpush.bf16.msra.mxu1 %v186_v17  ;;  %v188_v41 = vld [vmem:[%s290_s2] ss:$0 sm:$0xff] }
   0x6   :  { %32 = vst.msk [vmem:[%s289_s7 + $0x8] sm:$0xff] %vm30_vm0, %v29_v5 }
   0x7   :  { %v35_v7 = vsel %vm30_vm0, %v33_v6, 0.0  ;;  %v38_v9 = vsel %vm30_vm0, %v34_v8, 0.0  ;;  %v190_v11 = vpop.eup %189 }
   0x8   :  { %36 = vadd.xlane.f32.xlu0 %v35_v7  ;;  %v42_v12 = vmul.f32 32.0, %v190_v11  ;;  %vm46_vm1 = vweird.f32 %v190_v11  ;;  %107 = vmatpush.bf16.msra.mxu0 %v183_v19 }
   0x9   :  { %142 = vmatpush.bf16.msra.mxu1 %v185_v20 }
   0xa   :  { %v43_v13 = vsub.f32 1.0, %v42_v12 }
   0xc   :  { %v44_v14 = vmul.f32 %v190_v11, %v43_v13 }
   0xe   :  { %v45_v15 = vadd.f32 %v190_v11, %v44_v14 }
  0x10   :  { %39 = vadd.xlane.f32.xlu0 %v38_v9  ;;  %v47_v18 = vsel %vm46_vm1, %v190_v11, %v45_v15 }
  0x7b   :  { %v37_v21 = vpop.xlane.xlu0 %36 }
  0x7c   :  { %v48_v22 = vmul.f32 %v47_v18, %v37_v21 }
  0x7e   :  { %v50_v23 = vadd.f32 1e-05, %v48_v22 }
  0x80   :  { %191 = vrsqrt.f32 %v50_v23  ;;  %vm58_vm3 = vweird.f32 %v50_v23 }
  0x83   :  { %v40_v24 = vpop.xlane.xlu0 %39 }
  0x84   :  { %v49_v25 = vmul.f32 %v47_v18, %v40_v24 }
  0x86   :  { %v192_v26 = vpop.eup %191  ;;  %v51_v27 = vadd.f32 1e-05, %v49_v25 }
  0x87   :  { %v53_v28 = vmul.f32 %v192_v26, %v50_v23  ;;  %vm59_vm2 = vweird.f32 %v192_v26 }
  0x88   :  { %193 = vrsqrt.f32 %v51_v27  ;;  %vm60_vm4 = vmor %vm58_vm3, %vm59_vm2  ;;  %vm68_vm6 = vweird.f32 %v51_v27 }
  0x89   :  { %v54_v29 = vmul.f32 %v192_v26, %v53_v28 }
  0x8b   :  { %v55_v30 = vmul.f32 0.5, %v54_v29 }
  0x8d   :  { %v56_v31 = vsub.f32 1.5, %v55_v30 }
  0x8e   :  { %v194_v32 = vpop.eup %193 }
  0x8f   :  { %v63_v33 = vmul.f32 %v194_v32, %v51_v27  ;;  %v57_v34 = vmul.f32 %v192_v26, %v56_v31  ;;  %vm69_vm5 = vweird.f32 %v194_v32 }
  0x90   :  { %vm70_vm7 = vmor %vm68_vm6, %vm69_vm5 }
  0x91   :  { %v64_v35 = vmul.f32 %v194_v32, %v63_v33  ;;  %v61_v37 = vsel %vm60_vm4, %v192_v26, %v57_v34 }
  0x92   :  { %v72_v40 = vmul.f32 %v61_v37, %v28_v3 }
  0x93   :  { %v65_v36 = vmul.f32 0.5, %v64_v35 }
  0x94   :  { %v78_v44 = vmul.f32 %v188_v41, %v72_v40 }
  0x95   :  { %v66_v38 = vsub.f32 1.5, %v65_v36 }
  0x97   :  { %v67_v39 = vmul.f32 %v194_v32, %v66_v38 }
  0x99   :  { %v71_v42 = vsel %vm70_vm7, %v194_v32, %v67_v39 }
  0x9a   :  { %v73_v43 = vmul.f32 %v71_v42, %v29_v5 }
  0x9c   :  { %v79_v45 = vmul.f32 %v188_v41, %v73_v43 }
  0x9e   :  { %v80_v46 = vpack.c.bf16 %v79_v45, %v78_v44 }
  0xa0   :  { %173 = vmatmul.msk.bf16.vlgmr.msra.gmra.mxu0 %vm30_vm0, %v80_v46  ;;  %182 = vmatmul.msk.bf16.vlgmr.msra.gmra.mxu1 %vm30_vm0, %v80_v46 }
 0x11d   :  { %v109_v47 = vpop.f32.mrf.mxu0  ;;  %v144_v48 = vpop.f32.mrf.mxu1 }
 0x11e   :  { %v114_v49 = vpack.c.bf16 %v109_v47, %v109_v47  ;;  %v149_v50 = vpack.c.bf16 %v144_v48, %v144_v48 }
 0x120   :  { %117 = vst.msk [vmem:[%s293_s5] sm:$0xf] %vm116_vm8, %v114_v49 }
 0x121   :  { %151 = vst.msk [vmem:[%s294_s6] sm:$0xf] %vm116_vm8, %v149_v50 }
 0x125   :  { %v111_v51 = vpop.f32.mrf.mxu0  ;;  %v146_v52 = vpop.f32.mrf.mxu1 }
 0x126   :  { %v115_v53 = vpack.c.bf16 %v111_v51, %v111_v51  ;;  %v150_v54 = vpack.c.bf16 %v146_v52, %v146_v52 }
 0x128   :  { %118 = vst.msk [vmem:[%s293_s5 + $0x4] sm:$0xf] %vm116_vm8, %v115_v53 }
 0x129   :  { %152 = vst.msk [vmem:[%s294_s6 + $0x4] sm:$0xf] %vm116_vm8, %v150_v54 }

// kernel: dna_embedding_mamba_forward.14
= control target key start
LH: loop header
LB: loop body
LE: loop exit
PB: predicated region body
PF: predicated region fallthrough
CT: control target
= control target key end

     0   :  { %s1610_s24 = smov 0   ;;  %s1612_s25 = smov 0   ;;  %s1884_s0 = inlined_call_operand.vmem [shape: bf16[2,8,64], index: 0, kind: input, shape index: {}]   ;;  %s1885_s1 = inlined_call_operand.vmem [shape: bf16[2,8,64], index: 1, kind: input, shape index: {}]   ;;  %s1886_s2 = inlined_call_operand.vmem [shape: bf16[2,8,64], index: 2, kind: input, shape index: {}]   ;;  %s1887_s3 = inlined_call_operand.vmem [shape: bf16[2,8,32], index: 3, kind: input, shape index: {}]   ;;  %s1888_s4 = inlined_call_operand.vmem [shape: f32[16,64], index: 4, kind: input, shape index: {}]   ;;  %s1889_s5 = inlined_call_operand.vmem [shape: f32[1,64], index: 5, kind: input, shape index: {}]   ;;  %s1890_s6 = inlined_call_operand.vmem [shape: f32[1,64], index: 6, kind: input, shape index: {}]   ;;  %s1891_s7 = inlined_call_operand.vmem [shape: bf16[2,8,64], index: 7, kind: output, shape index: {}]  }
   0x1   :  { %s1614_s26 = smov 0  }
   0x2 LB: > { %s36_s27 = sadd.s32 1, %s1563_s25  ;;  %p1376_p0 = scmp.ge.s32.totalorder %s1567_s26, 1  ;;  %s1567_s26 = sphi %s1614_s26, %s17_s26   ;;  %s1563_s25 = sphi %s1612_s25, %s1897_s25   ;;  %s1559_s24 = sphi %s1610_s24, %s1896_s24  }
   0x3   : > { %p38_p1 = scmp.ge.s32.totalorder %s36_s27, 2  ;;  %p346_p2 = scmp.lt.s32.totalorder %s1567_s26, 3 }
   0x5   : > { %s1899_s27 = smov (%p38_p1, %s36_s27), 0  ;;  %p347_p3 = pnand %p1376_p0, %p346_p2 }
   0x6   : > { %p425_p4 = scmp.lt.s32.totalorder (!%p347_p3), %s1559_s24, 1 }
   0x7   : > { %350 = sbr.rel (%p347_p3) target bundleno = 245 (0xf5), region = 48 }
   0xc   : > { %v615_v0 = vlaneseq  ;;  %s1901_s24 = smov (!%p425_p4, %s1559_s24), 1  ;;  %v1503_v19 = vld [vmem:[%s1890_s6] ss:$0 sm:$0xff]  ;;  %vm486_vm2 = vcmask 523264   ;;  %v1569_v51 = vmov 0.0   ;;  %v1676_v59 = vld [vmem:[%s1888_s4 + $0x8] sm:$0xff] }
   0xd   : > { %s1628_s28 = sshll.u32 %s1901_s24, 2  ;;  %v1647_v36 = vld [vmem:[%s1888_s4] sm:$0xff]  ;;  %487 = vst.msk [vmem:[#allocation2] sm:$0xff] %vm486_vm2, %v1569_v51  ;;  %vm1164_vm7 = vcmask 1041409   ;;  %vm1167_vm8 = vcmask 1042434   ;;  %vm1170_vm9 = vcmask 1043459  }
   0xe   : > { %v616_v1 = vshrl.u32 %v615_v0, 7  ;;  %s461_s8 = scalar_lea.vmem %s1887_s3, %s1628_s28  ;;  %s444_s11 = scalar_lea.vmem %s1885_s1, %s1628_s28  ;;  %488 = vst.msk [vmem:[#allocation2 + $0x8] sm:$0xff] %vm486_vm2, %v1569_v51  ;;  %vm1173_vm10 = vcmask 1044484   ;;  %vm1176_vm11 = vcmask 1045509   ;;  %vm1179_vm12 = vcmask 1046534  }
   0xf   : > { %v514_v2 = vld [vmem:[%s461_s8] sm:$0xf]  ;;  %s434_s18 = scalar_lea.vmem %s1884_s0, %s1628_s28  ;;  %s454_s23 = scalar_lea.vmem %s1886_s2, %s1628_s28  ;;  %vm1182_vm13 = vcmask 1047559   ;;  %vm1186_vm14 = vcmask 519168  }
  0x10   : > { %1422 = vset.pattern.permute.xlu1 %v616_v1  ;;  %1410 = vset.pattern.permute.xlu0 %v616_v1  ;;  %v515_v3 = vunpack.c.l.bf16 %v514_v2  ;;  %v623_v13 = vadd.s32 8, %v616_v1  ;;  %v882_v16 = vadd.s32 16, %v616_v1  ;;  %v489_v18 = vld [vmem:[%s444_s11] sm:$0xf]  ;;  %v888_v23 = vadd.s32 24, %v616_v1  ;;  %s481_s9 = scalar_lea.vmem %s1891_s7, %s1628_s28 }
  0x11   : > { %1434 = vset.pattern.permute.xlu2 %v616_v1  ;;  %v490_v20 = vunpack.c.l.bf16 %v489_v18  ;;  %v1657_v45 = vld [vmem:[%s434_s18] sm:$0xf] }
  0x12   : > { %v640_v4 = vperm.slane %v515_v3, 2  ;;  %v653_v5 = vperm.slane %v515_v3, 3  ;;  %v614_v6 = vperm.slane %v515_v3, 0  ;;  %v627_v7 = vperm.slane %v515_v3, 1 }
  0x13   : > { %v666_v8 = vperm.slane %v515_v3, 4  ;;  %v679_v9 = vperm.slane %v515_v3, 5  ;;  %v692_v14 = vperm.slane %v515_v3, 6  ;;  %v705_v15 = vperm.slane %v515_v3, 7 }
  0x14   : > { %v1423_v10 = vpack.i.bf16 %v653_v5, %v640_v4  ;;  %v1411_v11 = vpack.i.bf16 %v627_v7, %v614_v6  ;;  %v495_v21 = vadd.f32 %v1503_v19, %v490_v20  ;;  %v511_v49 = vunpack.c.l.bf16 %v1657_v45 }
  0x15   : > { %v1435_v12 = vpack.i.bf16 %v679_v9, %v666_v8  ;;  %v1452_v17 = vpack.i.bf16 %v705_v15, %v692_v14 }
  0x16   : > { %v497_v22 = vmin.f32 %v495_v21, 20.0  ;;  %vm496_vm1 = vcmp.gt.f32.partialorder %v495_v21, 20.0 }
  0x18   : > { %1424 = vperm.xlu1 %1422, %v1423_v10   ;;  %1412 = vperm.xlu0 %1410, %v1411_v11   ;;  %v498_v24 = vmul.f32 1.442695, %v497_v22 }
  0x19   : > { %1436 = vperm.xlu2 %1434, %v1435_v12  }
  0x1a   : > { %1505 = vpow2.f32 %v498_v24 }
  0x20   : > { %1428 = vset.pattern.permute.xlu1 %v623_v13  ;;  %1416 = vset.pattern.permute.xlu0 %v623_v13  ;;  %v1506_v25 = vpop.eup %1505 }
  0x21   : > { %1446 = vset.pattern.permute.xlu2 %v623_v13  ;;  %v500_v26 = vadd.f32 1.0, %v1506_v25  ;;  %v503_v27 = vmul.f32 -0.5, %v1506_v25  ;;  %v506_v30 = vand.u32 2147483647, %v1506_v25 }
  0x23   : > { %1507 = vlog2.f32 %v500_v26  ;;  %v504_v28 = vadd.f32 1.0, %v503_v27  ;;  %vm507_vm0 = vcmp.lt.f32.partialorder %v506_v30, 0.0004427343 }
  0x25   : > { %v505_v32 = vmul.f32 %v1506_v25, %v504_v28 }
  0x28   : > { %1430 = vperm.xlu1 %1428, %v1423_v10   ;;  %1418 = vperm.xlu0 %1416, %v1411_v11  }
  0x29   : > { %1448 = vperm.xlu2 %1446, %v1435_v12   ;;  %v1508_v29 = vpop.eup %1507 }
  0x2a   : > { %v502_v31 = vmul.f32 0.6931472, %v1508_v29 }
  0x2c   : > { %v508_v33 = vsel %vm507_vm0, %v505_v32, %v502_v31 }
  0x2d   : > { %v1641_v34 = vsel %vm496_vm1, %v495_v21, %v508_v33 }
  0x2e   : > { %v524_v35 = vperm.slane %v1641_v34, 0  ;;  %v517_v37 = vrot.slane %v1641_v34, 1  ;;  %v518_v41 = vrot.slane %v1641_v34, 2  ;;  %v519_v47 = vrot.slane %v1641_v34, 3 }
  0x2f   : > { %v520_v53 = vrot.slane %v1641_v34, 4  ;;  %v1670_v56 = vmul.f32 %v511_v49, %v1641_v34  ;;  %v521_v63 = vrot.slane %v1641_v34, 5  ;;  %v522_v14 = vrot.slane %v1641_v34, 6 }
  0x30   : > { %1440 = vset.pattern.permute.xlu1 %v616_v1  ;;  %1457 = vset.pattern.permute.xlu0 %v882_v16  ;;  %v540_v38 = vmul.f32 %v524_v35, %v1647_v36  ;;  %v525_v39 = vperm.slane %v517_v37, 0  ;;  %v526_v43 = vperm.slane %v518_v41, 0  ;;  %v527_v52 = vperm.slane %v519_v47, 0 }
  0x31   : > { %1453 = vperm.xlu2 %1446, %v1452_v17   ;;  %v528_v57 = vperm.slane %v520_v53, 0  ;;  %v610_v60 = vrot.slane %v1670_v56, 4  ;;  %v611_v61 = vrot.slane %v1670_v56, 5  ;;  %v541_v1 = vmul.f32 %v524_v35, %v1676_v59 }
  0x32   : > { %v556_v40 = vmul.f32 1.442695, %v540_v38  ;;  %v542_v42 = vmul.f32 %v525_v39, %v1647_v36  ;;  %v544_v46 = vmul.f32 %v526_v43, %v1647_v36  ;;  %v546_v54 = vmul.f32 %v527_v52, %v1647_v36 }
  0x33   : > { %v548_v0 = vmul.f32 %v528_v57, %v1647_v36  ;;  %v722_v5 = vperm.slane %v610_v60, 0  ;;  %v723_v6 = vperm.slane %v611_v61, 0  ;;  %v529_v7 = vperm.slane %v521_v63, 0 }
  0x34   : > { %1509 = vpow2.f32 %v556_v40  ;;  %v560_v44 = vmul.f32 1.442695, %v542_v42  ;;  %v564_v50 = vmul.f32 1.442695, %v544_v46  ;;  %v568_v58 = vmul.f32 1.442695, %v546_v54 }
  0x35   : > { %v572_v8 = vmul.f32 1.442695, %v548_v0  ;;  %v543_v13 = vmul.f32 %v525_v39, %v1676_v59  ;;  %v1690_v18 = vperm.slane %v522_v14, 0  ;;  %v545_v19 = vmul.f32 %v526_v43, %v1676_v59 }
  0x36   : > { %1511 = vpow2.f32 %v560_v44  ;;  %v547_v24 = vmul.f32 %v527_v52, %v1676_v59  ;;  %v549_v29 = vmul.f32 %v528_v57, %v1676_v59  ;;  %v608_v31 = vrot.slane %v1670_v56, 2 }
  0x37   : > { %1513 = vpow2.f32 %v564_v50  ;;  %v566_v21 = vmul.f32 1.442695, %v545_v19  ;;  %v552_v22 = vmul.f32 %v1690_v18, %v1647_v36  ;;  %v609_v32 = vrot.slane %v1670_v56, 3 }
  0x38   : > { %1442 = vperm.xlu1 %1440, %v1452_v17   ;;  %1459 = vperm.xlu0 %1457, %v1411_v11   ;;  %1515 = vpow2.f32 %v568_v58  ;;  %v570_v27 = vmul.f32 1.442695, %v547_v24  ;;  %v574_v33 = vmul.f32 1.442695, %v549_v29  ;;  %v523_v38 = vrot.slane %v1641_v34, 7 }
  0x39   : > { %1469 = vset.pattern.permute.xlu2 %v882_v16  ;;  %1517 = vpow2.f32 %v572_v8  ;;  %v580_v25 = vmul.f32 1.442695, %v552_v22  ;;  %v607_v40 = vrot.slane %v1670_v56, 1  ;;  %v612_v41 = vrot.slane %v1670_v56, 6 }
  0x3a   : > { %v1510_v48 = vpop.eup %1509  ;;  %v613_v42 = vrot.slane %v1670_v56, 7  ;;  %v531_v46 = vperm.slane %v523_v38, 0  ;;  %v1710_v50 = vperm.slane %v609_v32, 0  ;;  %v718_v34 = vperm.slane %v1670_v56, 0  ;;  %v767_v56 = vld [vmem:[#allocation2 + $0x8] sm:$0xff] }
  0x3b   : > { %589 = vst.msk [vmem:[#allocation3] sm:$0xff] %vm486_vm2, %v1510_v48  ;;  %v1708_v48 = vperm.slane %v608_v31, 0  ;;  %v551_v51 = vmul.f32 %v529_v7, %v1676_v59  ;;  %v1718_v57 = vperm.slane %v612_v41, 0 }
  0x3c   : > { %v1512_v55 = vpop.eup %1511  ;;  %v1720_v58 = vperm.slane %v613_v42, 0  ;;  %v554_v60 = vmul.f32 %v531_v46, %v1647_v36  ;;  %v555_v14 = vmul.f32 %v531_v46, %v1676_v59 }
  0x3d   : > { %591 = vst.msk [vmem:[#allocation3 + $0x10] sm:$0xff] %vm486_vm2, %v1512_v55  ;;  %v1514_v2 = vpop.eup %1513  ;;  %v1715_v55 = vperm.slane %v607_v40, 0 }
  0x3e   : > { %593 = vst.msk [vmem:[#allocation3 + $0x20] sm:$0xff] %vm486_vm2, %v1514_v2  ;;  %v1516_v15 = vpop.eup %1515 }
  0x3f   : > { %595 = vst.msk [vmem:[#allocation3 + $0x30] sm:$0xff] %vm486_vm2, %v1516_v15  ;;  %v1518_v20 = vpop.eup %1517  ;;  %v1743_v15 = vld [vmem:[%s454_s23] sm:$0xf] }
  0x40   : > { %1463 = vset.pattern.permute.xlu1 %v888_v23  ;;  %1485 = vset.pattern.permute.xlu0 %v888_v23  ;;  %597 = vst.msk [vmem:[#allocation3 + $0x40] sm:$0xff] %vm486_vm2, %v1518_v20  ;;  %v1094_v19 = vunpack.c.l.bf16 %v1743_v15 }
  0x41   : > { %1471 = vperm.xlu2 %1469, %v1423_v10  }
  0x46   : > { %v803_v46 = vld [vmem:[#allocation3 + $0x30] sm:$0xff] }
  0x48   : > { %1465 = vperm.xlu1 %1463, %v1411_v11   ;;  %1487 = vperm.xlu0 %1485, %v1435_v12   ;;  %v558_v11 = vmul.f32 1.442695, %v541_v1 }
  0x49   : > { %1481 = vperm.xlu2 %1469, %v1435_v12   ;;  %v550_v12 = vmul.f32 %v529_v7, %v1647_v36 }
  0x4a   : > { %1519 = vpow2.f32 %v558_v11 }
  0x50   : > { %1476 = vperm.xlu1 %1463, %v1423_v10  }
  0x51   : > { %1497 = vset.pattern.permute.xlu2 %v888_v23  ;;  %v1520_v23 = vpop.eup %1519 }
  0x52   : > { %590 = vst.msk [vmem:[#allocation3 + $0x8] sm:$0xff] %vm486_vm2, %v1520_v23 }
  0x58   : > { %1491 = vset.pattern.permute.xlu1 %v882_v16  ;;  %v576_v16 = vmul.f32 1.442695, %v550_v12 }
  0x59   : > { %1499 = vperm.xlu2 %1497, %v1452_v17  }
  0x5a   : > { %1521 = vpow2.f32 %v576_v16  ;;  %v766_v16 = vld [vmem:[#allocation2] sm:$0xff] }
  0x60   : > { %1493 = vperm.xlu1 %1491, %v1452_v17   ;;  %v562_v17 = vmul.f32 1.442695, %v543_v13  ;;  %v1522_v26 = vpop.eup %1521 }
  0x61   : > { %599 = vst.msk [vmem:[#allocation3 + $0x50] sm:$0xff] %vm486_vm2, %v1522_v26 }
  0x62   : > { %1523 = vpow2.f32 %v562_v17  ;;  %v768_v17 = vld [vmem:[#allocation3] sm:$0xff] }
  0x63   : > { %1525 = vpow2.f32 %v566_v21  ;;  %v770_v22 = vmul.f32 %v768_v17, %v766_v16 }
  0x64   : > { %1527 = vpow2.f32 %v580_v25  ;;  %v779_v25 = vld [vmem:[#allocation3 + $0x10] sm:$0xff] }
  0x65   : > { %1529 = vpow2.f32 %v570_v27 }
  0x66   : > { %1531 = vpow2.f32 %v574_v33 }
  0x68   : > { %v1524_v28 = vpop.eup %1523 }
  0x69   : > { %592 = vst.msk [vmem:[#allocation3 + $0x18] sm:$0xff] %vm486_vm2, %v1524_v28  ;;  %v1526_v39 = vpop.eup %1525 }
  0x6a   : > { %594 = vst.msk [vmem:[#allocation3 + $0x28] sm:$0xff] %vm486_vm2, %v1526_v39  ;;  %v1528_v47 = vpop.eup %1527 }
  0x6b   : > { %v1530_v52 = vpop.eup %1529  ;;  %601 = vst.msk [vmem:[#allocation3 + $0x60] sm:$0xff] %vm486_vm2, %v1528_v47 }
  0x6c   : > { %596 = vst.msk [vmem:[#allocation3 + $0x38] sm:$0xff] %vm486_vm2, %v1530_v52 }
  0x73   : > { %v1437_v62 = vpop.permute.xlu2 %1436 }
  0x74   : > { %v1439_v3 = vunpack.i.h.bf16 %v1437_v62  ;;  %v1438_v4 = vunpack.i.l.bf16 %v1437_v62 }
  0x76   : > { %v742_v9 = vmul.f32 %v1438_v4, %v722_v5  ;;  %v744_v10 = vmul.f32 %v1439_v3, %v723_v6  ;;  %v578_v4 = vmul.f32 1.442695, %v551_v51 }
  0x78   : > { %758 = vst.msk [vmem:[#allocation4 + $0x40] sm:$0xff] %vm486_vm2, %v742_v9  ;;  %1533 = vpow2.f32 %v578_v4 }
  0x79   : > { %760 = vst.msk [vmem:[#allocation4 + $0x50] sm:$0xff] %vm486_vm2, %v744_v10  ;;  %v553_v10 = vmul.f32 %v1690_v18, %v1676_v59  ;;  %v586_v18 = vmul.f32 1.442695, %v555_v14  ;;  %v1382_v59 = vmul.f32 -1.442695, %v1094_v19 }
  0x7b   : > { %v582_v12 = vmul.f32 1.442695, %v553_v10 }
  0x83   : > { %v1449_v30 = vpop.permute.xlu2 %1448 }
  0x84   : > { %v1451_v35 = vunpack.i.h.bf16 %v1449_v30  ;;  %v1450_v37 = vunpack.i.l.bf16 %v1449_v30 }
  0x86   : > { %v743_v43 = vmul.f32 %v1450_v37, %v722_v5  ;;  %v745_v44 = vmul.f32 %v1451_v35, %v723_v6  ;;  %v584_v5 = vmul.f32 1.442695, %v554_v60  ;;  %v1532_v6 = vpop.eup %1531  ;;  %v791_v35 = vld [vmem:[#allocation3 + $0x20] sm:$0xff] }
  0x87   : > { %598 = vst.msk [vmem:[#allocation3 + $0x48] sm:$0xff] %vm486_vm2, %v1532_v6  ;;  %v1534_v20 = vpop.eup %1533 }
  0x88   : > { %759 = vst.msk [vmem:[#allocation4 + $0x48] sm:$0xff] %vm486_vm2, %v743_v43  ;;  %1535 = vpow2.f32 %v584_v5 }
  0x89   : > { %761 = vst.msk [vmem:[#allocation4 + $0x58] sm:$0xff] %vm486_vm2, %v745_v44  ;;  %1537 = vpow2.f32 %v582_v12 }
  0x8a   : > { %v1425_v53 = vpop.permute.xlu1 %1424  ;;  %v1413_v54 = vpop.permute.xlu0 %1412  ;;  %1539 = vpow2.f32 %v586_v18  ;;  %600 = vst.msk [vmem:[#allocation3 + $0x58] sm:$0xff] %vm486_vm2, %v1534_v20 }
  0x8b   : > { %v1427_v61 = vunpack.i.h.bf16 %v1425_v53  ;;  %v1426_v62 = vunpack.i.l.bf16 %v1425_v53  ;;  %v1415_v63 = vunpack.i.h.bf16 %v1413_v54  ;;  %v1414_v0 = vunpack.i.l.bf16 %v1413_v54  ;;  %v1454_v1 = vpop.permute.xlu2 %1453  ;;  %v815_v53 = vld [vmem:[#allocation3 + $0x40] sm:$0xff] }
  0x8c   : > { %v1456_v2 = vunpack.i.h.bf16 %v1454_v1  ;;  %v1455_v3 = vunpack.i.l.bf16 %v1454_v1  ;;  %1541 = vpow2.f32 %v1382_v59 }
  0x8d   : > { %v738_v7 = vmul.f32 %v1426_v62, %v1708_v48  ;;  %v740_v8 = vmul.f32 %v1427_v61, %v1710_v50  ;;  %v734_v36 = vmul.f32 %v1414_v0, %v718_v34  ;;  %v736_v9 = vmul.f32 %v1415_v63, %v1715_v55  ;;  %v820_v62 = vld [vmem:[#allocation4 + $0x40] sm:$0xff]  ;;  %v827_v63 = vld [vmem:[#allocation3 + $0x50] sm:$0xff] }
  0x8e   : > { %v747_v11 = vmul.f32 %v1455_v3, %v1718_v57  ;;  %v749_v13 = vmul.f32 %v1456_v2, %v1720_v58  ;;  %v1536_v21 = vpop.eup %1535  ;;  %v780_v2 = vld [vmem:[#allocation3 + $0x18] sm:$0xff] }
  0x8f   : > { %754 = vst.msk [vmem:[#allocation4 + $0x20] sm:$0xff] %vm486_vm2, %v738_v7  ;;  %v1538_v23 = vpop.eup %1537 }
  0x90   : > { %756 = vst.msk [vmem:[#allocation4 + $0x30] sm:$0xff] %vm486_vm2, %v740_v8  ;;  %v1540_v30 = vpop.eup %1539 }
  0x91   : > { %750 = vst.msk [vmem:[#allocation4] sm:$0xff] %vm486_vm2, %v734_v36  ;;  %v832_v36 = vld [vmem:[#allocation4 + $0x50] sm:$0xff] }
  0x92   : > { %752 = vst.msk [vmem:[#allocation4 + $0x10] sm:$0xff] %vm486_vm2, %v736_v9  ;;  %v1542_v51 = vpop.eup %1541 }
  0x93   : > { %763 = vst.msk [vmem:[#allocation4 + $0x68] sm:$0xff] %vm486_vm2, %v747_v11  ;;  %v1767_v54 = vadd.f32 1.0, %v1542_v51  ;;  %v792_v11 = vld [vmem:[#allocation3 + $0x28] sm:$0xff] }
  0x94   : > { %765 = vst.msk [vmem:[#allocation4 + $0x78] sm:$0xff] %vm486_vm2, %v749_v13 }
  0x95   : > { %603 = vst.msk [vmem:[#allocation3 + $0x70] sm:$0xff] %vm486_vm2, %v1536_v21  ;;  %1543 = vrcp.f32 %v1767_v54  ;;  %v804_v21 = vld [vmem:[#allocation3 + $0x38] sm:$0xff]  ;;  %vm1104_vm3 = vweird.f32 %v1767_v54 }
  0x96   : > { %602 = vst.msk [vmem:[#allocation3 + $0x68] sm:$0xff] %vm486_vm2, %v1538_v23  ;;  %v796_v44 = vld [vmem:[#allocation4 + $0x20] sm:$0xff] }
  0x97   : > { %604 = vst.msk [vmem:[#allocation3 + $0x78] sm:$0xff] %vm486_vm2, %v1540_v30  ;;  %v839_v23 = vld [vmem:[#allocation3 + $0x60] sm:$0xff] }
  0x98   : > { %v772_v24 = vld [vmem:[#allocation4] sm:$0xff] }
  0x99   : > { %v774_v26 = vadd.f32 %v772_v24, %v770_v22  ;;  %v784_v27 = vld [vmem:[#allocation4 + $0x10] sm:$0xff] }
  0x9a   : > { %v1431_v28 = vpop.permute.xlu1 %1430  ;;  %v1419_v29 = vpop.permute.xlu0 %1418 }
  0x9b   : > { %776 = vst.msk [vmem:[#allocation4] sm:$0xff] %vm486_vm2, %v774_v26  ;;  %v781_v31 = vmul.f32 %v779_v25, %v774_v26  ;;  %v1433_v32 = vunpack.i.h.bf16 %v1431_v28  ;;  %v1432_v33 = vunpack.i.l.bf16 %v1431_v28  ;;  %v1421_v37 = vunpack.i.h.bf16 %v1419_v29  ;;  %v1774_v13 = vpop.eup %1543  ;;  %v1778_v17 = vpop.permute.xlu2 %1471  ;;  %v816_v25 = vld [vmem:[#allocation3 + $0x48] sm:$0xff] }
  0x9c   : > { %v1420_v38 = vunpack.i.l.bf16 %v1419_v29  ;;  %v1100_v22 = vmul.f32 %v1774_v13, %v1767_v54  ;;  %vm1105_vm4 = vweird.f32 %v1774_v13 }
  0x9d   : > { %v786_v39 = vadd.f32 %v784_v27, %v781_v31  ;;  %v739_v40 = vmul.f32 %v1432_v33, %v1708_v48  ;;  %v741_v41 = vmul.f32 %v1433_v32, %v1710_v50  ;;  %v737_v47 = vmul.f32 %v1421_v37, %v1715_v55  ;;  %v769_v50 = vld [vmem:[#allocation3 + $0x8] sm:$0xff]  ;;  %v828_v37 = vld [vmem:[#allocation3 + $0x58] sm:$0xff]  ;;  %vm1809_vm5 = vmor %vm1104_vm3, %vm1105_vm4 }
  0x9e   : > { %v735_v42 = vmul.f32 %v1420_v38, %v718_v34  ;;  %v808_v34 = vld [vmem:[#allocation4 + $0x30] sm:$0xff]  ;;  %v771_v61 = vmul.f32 %v769_v50, %v767_v56  ;;  %v1101_v26 = vsub.f32 1.0, %v1100_v22  ;;  %v821_v32 = vld [vmem:[#allocation4 + $0x48] sm:$0xff]  ;;  %v1473_v38 = vunpack.i.l.bf16 %v1778_v17 }
  0x9f   : > { %788 = vst.msk [vmem:[#allocation4 + $0x10] sm:$0xff] %vm486_vm2, %v786_v39  ;;  %v793_v43 = vmul.f32 %v791_v35, %v786_v39  ;;  %v851_v35 = vld [vmem:[#allocation3 + $0x70] sm:$0xff] }
  0xa0   : > { %755 = vst.msk [vmem:[#allocation4 + $0x28] sm:$0xff] %vm486_vm2, %v739_v40 }
  0xa1   : > { %v798_v52 = vadd.f32 %v796_v44, %v793_v43  ;;  %757 = vst.msk [vmem:[#allocation4 + $0x38] sm:$0xff] %vm486_vm2, %v741_v41  ;;  %v1102_v43 = vmul.f32 %v1774_v13, %v1101_v26 }
  0xa2   : > { %751 = vst.msk [vmem:[#allocation4 + $0x8] sm:$0xff] %vm486_vm2, %v735_v42  ;;  %v864_v40 = vld [vmem:[#allocation4] sm:$0xff] }
  0xa3   : > { %800 = vst.msk [vmem:[#allocation4 + $0x20] sm:$0xff] %vm486_vm2, %v798_v52  ;;  %v805_v48 = vmul.f32 %v803_v46, %v798_v52  ;;  %v1788_v42 = vpop.permute.xlu2 %1481 }
  0xa4   : > { %753 = vst.msk [vmem:[#allocation4 + $0x18] sm:$0xff] %vm486_vm2, %v737_v47 }
  0xa5   : > { %v810_v60 = vadd.f32 %v808_v34, %v805_v48 }
  0xa6   : > { %v866_v41 = vld [vmem:[#allocation4 + $0x10] sm:$0xff] }
  0xa7   : > { %812 = vst.msk [vmem:[#allocation4 + $0x30] sm:$0xff] %vm486_vm2, %v810_v60  ;;  %v817_v55 = vmul.f32 %v815_v53, %v810_v60  ;;  %v797_v20 = vld [vmem:[#allocation4 + $0x28] sm:$0xff]  ;;  %v1474_v53 = vunpack.i.h.bf16 %v1778_v17 }
  0xa8   : > { %v809_v24 = vld [vmem:[#allocation4 + $0x38] sm:$0xff] }
  0xa9   : > { %v822_v0 = vadd.f32 %v820_v62, %v817_v55  ;;  %v773_v1 = vld [vmem:[#allocation4 + $0x8] sm:$0xff]  ;;  %v1483_v55 = vunpack.i.l.bf16 %v1788_v42 }
  0xaa   : > { %v775_v3 = vadd.f32 %v773_v1, %v771_v61  ;;  %v1443_v4 = vpop.permute.xlu1 %1442  ;;  %v1460_v59 = vpop.permute.xlu0 %1459  ;;  %v868_v52 = vld [vmem:[#allocation4 + $0x20] sm:$0xff]  ;;  %v1484_v61 = vunpack.i.h.bf16 %v1788_v42  ;;  %v840_v1 = vld [vmem:[#allocation3 + $0x68] sm:$0xff] }
  0xab   : > { %824 = vst.msk [vmem:[#allocation4 + $0x40] sm:$0xff] %vm486_vm2, %v822_v0  ;;  %v829_v5 = vmul.f32 %v827_v63, %v822_v0  ;;  %v785_v6 = vld [vmem:[#allocation4 + $0x18] sm:$0xff]  ;;  %v1445_v7 = vunpack.i.h.bf16 %v1443_v4  ;;  %v1444_v8 = vunpack.i.l.bf16 %v1443_v4  ;;  %v1462_v28 = vunpack.i.h.bf16 %v1460_v59 }
  0xac   : > { %777 = vst.msk [vmem:[#allocation4 + $0x8] sm:$0xff] %vm486_vm2, %v775_v3  ;;  %v782_v9 = vmul.f32 %v780_v2, %v775_v3  ;;  %v1461_v29 = vunpack.i.l.bf16 %v1460_v59  ;;  %v833_v0 = vld [vmem:[#allocation4 + $0x58] sm:$0xff]  ;;  %v1504_v3 = vld [vmem:[%s1889_s5] ss:$0 sm:$0xff] }
  0xad   : > { %v834_v10 = vadd.f32 %v832_v36, %v829_v5  ;;  %v746_v12 = vmul.f32 %v1444_v8, %v1718_v57  ;;  %v748_v16 = vmul.f32 %v1445_v7, %v1720_v58  ;;  %v978_v47 = vmul.f32 %v1462_v28, %v866_v41 }
  0xae   : > { %v787_v14 = vadd.f32 %v785_v6, %v782_v9  ;;  %v976_v46 = vmul.f32 %v1461_v29, %v864_v40  ;;  %v1802_v6 = vadd.f32 %v1774_v13, %v1102_v43  ;;  %v870_v36 = vld [vmem:[#allocation4 + $0x30] sm:$0xff]  ;;  %v980_v9 = vmul.f32 %v1473_v38, %v868_v52  ;;  %v857_v43 = vld [vmem:[#allocation4 + $0x78] sm:$0xff] }
  0xaf   : > { %836 = vst.msk [vmem:[#allocation4 + $0x50] sm:$0xff] %vm486_vm2, %v834_v10  ;;  %v841_v30 = vmul.f32 %v839_v23, %v834_v10  ;;  %v852_v23 = vld [vmem:[#allocation3 + $0x78] sm:$0xff]  ;;  %v1823_v26 = vmul.f32 %v1504_v3, %v511_v49 }
  0xb0   : > { %789 = vst.msk [vmem:[#allocation4 + $0x18] sm:$0xff] %vm486_vm2, %v787_v14  ;;  %v794_v18 = vmul.f32 %v792_v11, %v787_v14  ;;  %v992_v10 = vsel %vm486_vm2, %v976_v46, 0.0  ;;  %v1108_v14 = vand.u32 2147483647, %v1767_v54 }
  0xb1   : > { %762 = vst.msk [vmem:[#allocation4 + $0x60] sm:$0xff] %vm486_vm2, %v746_v12  ;;  %v1073_v15 = vrot.slane %v1823_v26, 4 }
  0xb2   : > { %v799_v57 = vadd.f32 %v797_v20, %v794_v18  ;;  %764 = vst.msk [vmem:[#allocation4 + $0x70] sm:$0xff] %vm486_vm2, %v748_v16  ;;  %v872_v11 = vld [vmem:[#allocation4 + $0x40] sm:$0xff]  ;;  %v1001_v16 = vsel %vm486_vm2, %v978_v47, 0.0  ;;  %v1110_v20 = vand.u32 2147483648, %v1767_v54  ;;  %v1107_v54 = vsel %vm1809_vm5, %v1774_v13, %v1802_v6 }
  0xb3   : > { %v865_v62 = vld [vmem:[#allocation4 + $0x8] sm:$0xff]  ;;  %vm1829_vm6 = vcmp.eq.f32.partialorder %v1108_v14, 8.507059e+37 }
  0xb4   : > { %801 = vst.msk [vmem:[#allocation4 + $0x28] sm:$0xff] %vm486_vm2, %v799_v57  ;;  %v806_v58 = vmul.f32 %v804_v21, %v799_v57 }
  0xb6   : > { %v811_v27 = vadd.f32 %v809_v24, %v806_v58  ;;  %v845_v58 = vld [vmem:[#allocation4 + $0x68] sm:$0xff]  ;;  %v982_v24 = vmul.f32 %v1474_v53, %v870_v36  ;;  %v874_v28 = vld [vmem:[#allocation4 + $0x50] sm:$0xff] }
  0xb7   : > { %v867_v63 = vld [vmem:[#allocation4 + $0x18] sm:$0xff] }
  0xb8   : > { %813 = vst.msk [vmem:[#allocation4 + $0x38] sm:$0xff] %vm486_vm2, %v811_v27  ;;  %v818_v31 = vmul.f32 %v816_v25, %v811_v27  ;;  %v844_v33 = vld [vmem:[#allocation4 + $0x60] sm:$0xff]  ;;  %v984_v25 = vmul.f32 %v1483_v55, %v872_v11 }
  0xb9   : > { %v846_v39 = vadd.f32 %v844_v33, %v841_v30  ;;  %v856_v60 = vld [vmem:[#allocation4 + $0x70] sm:$0xff]  ;;  %v1111_v33 = vor.u32 1.1754944e-38, %v1110_v20 }
  0xba   : > { %v823_v44 = vadd.f32 %v821_v32, %v818_v31  ;;  %v1466_v51 = vpop.permute.xlu1 %1465  ;;  %v1488_v7 = vpop.permute.xlu0 %1487  ;;  %v1028_v46 = vsel %vm486_vm2, %v984_v25, 0.0 }
  0xbb   : > { %848 = vst.msk [vmem:[#allocation4 + $0x60] sm:$0xff] %vm486_vm2, %v846_v39  ;;  %v853_v48 = vmul.f32 %v851_v35, %v846_v39  ;;  %v1468_v56 = vunpack.i.h.bf16 %v1466_v51  ;;  %v1467_v50 = vunpack.i.l.bf16 %v1466_v51  ;;  %v1489_v59 = vunpack.i.l.bf16 %v1488_v7  ;;  %v869_v41 = vld [vmem:[#allocation4 + $0x28] sm:$0xff] }
  0xbc   : > { %825 = vst.msk [vmem:[#allocation4 + $0x48] sm:$0xff] %vm486_vm2, %v823_v44  ;;  %v830_v34 = vmul.f32 %v828_v37, %v823_v44  ;;  %v1490_v35 = vunpack.i.h.bf16 %v1488_v7  ;;  %v986_v44 = vmul.f32 %v1484_v61, %v874_v28  ;;  %v1019_v61 = vsel %vm486_vm2, %v982_v24, 0.0 }
  0xbd   : > { %v858_v2 = vadd.f32 %v856_v60, %v853_v48  ;;  %v977_v4 = vmul.f32 %v1467_v50, %v865_v62  ;;  %v979_v5 = vmul.f32 %v1468_v56, %v867_v63  ;;  %v1112_v3 = vsel %vm1829_vm6, %v1111_v33, %v1107_v54 }
  0xbe   : > { %v835_v8 = vadd.f32 %v833_v0, %v830_v34  ;;  %v1010_v34 = vsel %vm486_vm2, %v980_v9, 0.0  ;;  %v1037_v6 = vsel %vm486_vm2, %v986_v44, 0.0  ;;  %v1848_v12 = vmul.f32 %v1112_v3, %v1094_v19 }
  0xbf   : > { %860 = vst.msk [vmem:[#allocation4 + $0x70] sm:$0xff] %vm486_vm2, %v858_v2  ;;  %v993_v17 = vsel %vm486_vm2, %v977_v4, 0.0  ;;  %v1002_v18 = vsel %vm486_vm2, %v979_v5, 0.0  ;;  %v871_v42 = vld [vmem:[#allocation4 + $0x38] sm:$0xff] }
  0xc0   : > { %837 = vst.msk [vmem:[#allocation4 + $0x58] sm:$0xff] %vm486_vm2, %v835_v8  ;;  %v842_v21 = vmul.f32 %v840_v1, %v835_v8  ;;  %v994_v22 = vadd.f32 %v993_v17, %v992_v10  ;;  %v1003_v57 = vadd.f32 %v1002_v18, %v1001_v16 }
  0xc1   : > { %862 = vst.msk [vmem:[#allocation2] sm:$0xff] %vm486_vm2, %v858_v2 }
  0xc2   : > { %v847_v27 = vadd.f32 %v845_v58, %v842_v21  ;;  %v995_v29 = vrot.slane %v994_v22, 4  ;;  %v1004_v30 = vrot.slane %v1003_v57, 4  ;;  %v1477_v32 = vpop.permute.xlu1 %1476  ;;  %v1500_v21 = vpop.permute.xlu2 %1499 }
  0xc3   : > { %v873_v37 = vld [vmem:[#allocation4 + $0x48] sm:$0xff]  ;;  %v1479_v45 = vunpack.i.h.bf16 %v1477_v32  ;;  %v1478_v49 = vunpack.i.l.bf16 %v1477_v32  ;;  %v1502_v58 = vunpack.i.h.bf16 %v1500_v21  ;;  %v1501_v28 = vunpack.i.l.bf16 %v1500_v21 }
  0xc4   : > { %849 = vst.msk [vmem:[#allocation4 + $0x68] sm:$0xff] %vm486_vm2, %v847_v27  ;;  %v854_v38 = vmul.f32 %v852_v23, %v847_v27  ;;  %v996_v39 = vadd.f32 %v995_v29, %v994_v22  ;;  %v1005_v40 = vadd.f32 %v1004_v30, %v1003_v57  ;;  %v985_v13 = vmul.f32 %v1489_v59, %v873_v37 }
  0xc5   : > { %v981_v47 = vmul.f32 %v1478_v49, %v869_v41  ;;  %v983_v51 = vmul.f32 %v1479_v45, %v871_v42  ;;  %v1070_v57 = vrot.slane %v1823_v26, 1  ;;  %v1116_v27 = vrot.slane %v1848_v12, 1 }
  0xc6   : > { %v859_v52 = vadd.f32 %v857_v43, %v854_v38  ;;  %v997_v48 = vrot.slane %v996_v39, 2  ;;  %v1006_v56 = vrot.slane %v1005_v40, 2  ;;  %v1029_v50 = vsel %vm486_vm2, %v985_v13, 0.0 }
  0xc7   : > { %v875_v53 = vld [vmem:[#allocation4 + $0x58] sm:$0xff]  ;;  %v1030_v60 = vadd.f32 %v1029_v50, %v1028_v46  ;;  %v1011_v55 = vsel %vm486_vm2, %v981_v47, 0.0  ;;  %v1020_v62 = vsel %vm486_vm2, %v983_v51, 0.0  ;;  %v1071_v32 = vrot.slane %v1823_v26, 2  ;;  %v878_v47 = vld [vmem:[#allocation4 + $0x70] sm:$0xff] }
  0xc8   : > { %861 = vst.msk [vmem:[#allocation4 + $0x78] sm:$0xff] %vm486_vm2, %v859_v52  ;;  %v1007_v63 = vadd.f32 %v1006_v56, %v1005_v40  ;;  %v987_v0 = vmul.f32 %v1490_v35, %v875_v53  ;;  %v1012_v1 = vadd.f32 %v1011_v55, %v1010_v34  ;;  %v998_v2 = vadd.f32 %v997_v48, %v996_v39  ;;  %v876_v56 = vld [vmem:[#allocation4 + $0x60] sm:$0xff] }
  0xc9   : > { %863 = vst.msk [vmem:[#allocation2 + $0x8] sm:$0xff] %vm486_vm2, %v859_v52  ;;  %v1031_v4 = vrot.slane %v1030_v60, 4  ;;  %v1021_v5 = vadd.f32 %v1020_v62, %v1019_v61  ;;  %v1072_v45 = vrot.slane %v1823_v26, 3  ;;  %v1117_v43 = vrot.slane %v1848_v12, 2 }
  0xca   : > { %v1008_v7 = vrot.slane %v1007_v63, 1  ;;  %v1038_v8 = vsel %vm486_vm2, %v987_v0, 0.0  ;;  %v1013_v36 = vrot.slane %v1012_v1, 4  ;;  %v999_v16 = vrot.slane %v998_v2, 1 }
  0xcb   : > { %v1032_v9 = vadd.f32 %v1031_v4, %v1030_v60  ;;  %v1039_v10 = vadd.f32 %v1038_v8, %v1037_v6  ;;  %v1022_v11 = vrot.slane %v1021_v5, 4  ;;  %v877_v33 = vld [vmem:[#allocation4 + $0x68] sm:$0xff]  ;;  %v1118_v48 = vrot.slane %v1848_v12, 3 }
  0xcc   : > { %v1014_v14 = vadd.f32 %v1013_v36, %v1012_v1  ;;  %v1009_v22 = vadd.f32 %v1008_v7, %v1007_v63  ;;  %v1000_v29 = vadd.f32 %v999_v16, %v998_v2  ;;  %v989_v44 = vmul.f32 %v1501_v28, %v877_v33 }
  0xcd   : > { %v1033_v17 = vrot.slane %v1032_v9, 2  ;;  %v1040_v18 = vrot.slane %v1039_v10, 4  ;;  %v1023_v20 = vadd.f32 %v1022_v11, %v1021_v5  ;;  %v1074_v5 = vrot.slane %v1823_v26, 5 }
  0xce   : > { %v1015_v59 = vrot.slane %v1014_v14, 2  ;;  %v1086_v35 = vadd.f32 %v1070_v57, %v1009_v22  ;;  %v1085_v51 = vadd.f32 %v1823_v26, %v1000_v29  ;;  %v1047_v2 = vsel %vm486_vm2, %v989_v44, 0.0 }
  0xcf   : > { %v1034_v23 = vadd.f32 %v1033_v17, %v1032_v9  ;;  %v1041_v24 = vadd.f32 %v1040_v18, %v1039_v10  ;;  %v1024_v25 = vrot.slane %v1023_v20, 2  ;;  %v879_v54 = vld [vmem:[#allocation4 + $0x78] sm:$0xff]  ;;  %v1119_v11 = vrot.slane %v1848_v12, 4 }
  0xd0   : > { %v1016_v19 = vadd.f32 %v1015_v59, %v1014_v14  ;;  %v991_v49 = vmul.f32 %v1502_v58, %v879_v54  ;;  %v1132_v34 = vmul.f32 %v1116_v27, %v1086_v35  ;;  %v1131_v17 = vmul.f32 %v1848_v12, %v1085_v51 }
  0xd1   : > { %v1042_v30 = vrot.slane %v1041_v24, 2  ;;  %v1025_v31 = vadd.f32 %v1024_v25, %v1023_v20  ;;  %v1035_v39 = vrot.slane %v1034_v23, 1  ;;  %v1120_v20 = vrot.slane %v1848_v12, 5 }
  0xd2   : > { %v1017_v37 = vrot.slane %v1016_v19, 1  ;;  %v1494_v38 = vpop.permute.xlu1 %1493  ;;  %v1056_v63 = vsel %vm486_vm2, %v991_v49, 0.0  ;;  %v1140_v7 = vpack.c.bf16 %v1132_v34, %v1132_v34  ;;  %v1139_v54 = vpack.c.bf16 %v1131_v17, %v1131_v17 }
  0xd3   : > { %v1043_v40 = vadd.f32 %v1042_v30, %v1041_v24  ;;  %v1026_v13 = vrot.slane %v1025_v31, 1  ;;  %v1496_v41 = vunpack.i.h.bf16 %v1494_v38  ;;  %v1495_v46 = vunpack.i.l.bf16 %v1494_v38 }
  0xd4   : > { %v1018_v42 = vadd.f32 %v1017_v37, %v1016_v19  ;;  %v1036_v62 = vadd.f32 %v1035_v39, %v1034_v23  ;;  %v1156_v22 = vunpack.c.l.b16 %v1140_v7  ;;  %v1076_v19 = vrot.slane %v1823_v26, 7 }
  0xd5   : > { %v1027_v52 = vadd.f32 %v1026_v13, %v1025_v31  ;;  %v990_v50 = vmul.f32 %v1496_v41, %v878_v47  ;;  %v1044_v53 = vrot.slane %v1043_v40, 1  ;;  %v988_v55 = vmul.f32 %v1495_v46, %v876_v56 }
  0xd6   : > { %v1087_v60 = vadd.f32 %v1071_v32, %v1018_v42  ;;  %v1089_v10 = vadd.f32 %v1073_v15, %v1036_v62  ;;  %v1163_v28 = vrot.slane %v1156_v22, 7  ;;  %v1075_v37 = vrot.slane %v1823_v26, 6 }
  0xd7   : > { %v1088_v61 = vadd.f32 %v1072_v45, %v1027_v52  ;;  %v1055_v0 = vsel %vm486_vm2, %v990_v50, 0.0  ;;  %v1046_v3 = vsel %vm486_vm2, %v988_v55, 0.0  ;;  %v1045_v8 = vadd.f32 %v1044_v53, %v1043_v40 }
  0xd8   : > { %v1133_v1 = vmul.f32 %v1117_v43, %v1087_v60  ;;  %v1057_v4 = vadd.f32 %v1056_v63, %v1055_v0  ;;  %v1048_v6 = vadd.f32 %v1047_v2, %v1046_v3  ;;  %v1135_v23 = vmul.f32 %v1119_v11, %v1089_v10 }
  0xd9   : > { %v1134_v36 = vmul.f32 %v1118_v48, %v1088_v61  ;;  %v1090_v57 = vadd.f32 %v1074_v5, %v1045_v8  ;;  %v1155_v45 = vunpack.c.l.b16 %v1139_v54  ;;  %v1122_v38 = vrot.slane %v1848_v12, 7 }
  0xda   : > { %v1058_v9 = vrot.slane %v1057_v4, 4  ;;  %v1141_v14 = vpack.c.bf16 %v1133_v1, %v1133_v1  ;;  %v1049_v16 = vrot.slane %v1048_v6, 4  ;;  %v1143_v32 = vpack.c.bf16 %v1135_v23, %v1135_v23 }
  0xdb   : > { %v1142_v59 = vpack.c.bf16 %v1134_v36, %v1134_v36  ;;  %v1136_v29 = vmul.f32 %v1120_v20, %v1090_v57  ;;  %v1121_v40 = vrot.slane %v1848_v12, 6  ;;  %v1165_v13 = vsel %vm1164_vm7, %v1163_v28, %v1155_v45 }
  0xdc   : > { %v1059_v18 = vadd.f32 %v1058_v9, %v1057_v4  ;;  %v1050_v21 = vadd.f32 %v1049_v16, %v1048_v6  ;;  %v1157_v24 = vunpack.c.l.b16 %v1141_v14  ;;  %v1159_v44 = vunpack.c.l.b16 %v1143_v32 }
  0xdd   : > { %v1158_v30 = vunpack.c.l.b16 %v1142_v59  ;;  %v1144_v41 = vpack.c.bf16 %v1136_v29, %v1136_v29 }
  0xde   : > { %v1060_v58 = vrot.slane %v1059_v18, 2  ;;  %v1051_v25 = vrot.slane %v1050_v21, 2  ;;  %v1166_v33 = vrot.slane %v1157_v24, 6  ;;  %v1172_v50 = vrot.slane %v1159_v44, 4 }
  0xdf   : > { %v1169_v42 = vrot.slane %v1158_v30, 5  ;;  %v1160_v26 = vunpack.c.l.b16 %v1144_v41 }
  0xe0   : > { %v1061_v27 = vadd.f32 %v1060_v58, %v1059_v18  ;;  %v1052_v15 = vadd.f32 %v1051_v25, %v1050_v21  ;;  %v1168_v46 = vsel %vm1167_vm8, %v1166_v33, %v1165_v13 }
  0xe1   : > { %v1171_v48 = vsel %vm1170_vm9, %v1169_v42, %v1168_v46  ;;  %v1175_v55 = vrot.slane %v1160_v26, 3 }
  0xe2   : > { %v1062_v31 = vrot.slane %v1061_v27, 1  ;;  %v1053_v35 = vrot.slane %v1052_v15, 1  ;;  %v1174_v12 = vsel %vm1173_vm10, %v1172_v50, %v1171_v48 }
  0xe3   : > { %v1177_v63 = vsel %vm1176_vm11, %v1175_v55, %v1174_v12 }
  0xe4   : > { %v1063_v49 = vadd.f32 %v1062_v31, %v1061_v27  ;;  %v1054_v39 = vadd.f32 %v1053_v35, %v1052_v15 }
  0xe6   : > { %v1092_v43 = vadd.f32 %v1076_v19, %v1063_v49  ;;  %v1091_v47 = vadd.f32 %v1075_v37, %v1054_v39 }
  0xe8   : > { %v1138_v51 = vmul.f32 %v1122_v38, %v1092_v43  ;;  %v1137_v52 = vmul.f32 %v1121_v40, %v1091_v47 }
  0xea   : > { %v1146_v56 = vpack.c.bf16 %v1138_v51, %v1138_v51  ;;  %v1145_v34 = vpack.c.bf16 %v1137_v52, %v1137_v52 }
  0xec   : > { %v1162_v53 = vunpack.c.l.b16 %v1146_v56  ;;  %v1161_v60 = vunpack.c.l.b16 %v1145_v34 }
  0xee   : > { %v1181_v62 = vrot.slane %v1162_v53, 1  ;;  %v1178_v61 = vrot.slane %v1161_v60, 2 }
  0xf0   : > { %v1180_v0 = vsel %vm1179_vm12, %v1178_v61, %v1177_v63 }
  0xf1   : > { %v1183_v1 = vsel %vm1182_vm13, %v1181_v62, %v1180_v0 }
  0xf2   : > { %v1184_v2 = vpack.c.b16 %v1183_v1, %v1183_v1 }
  0xf4   : > { %1187 = vst.msk [vmem:[%s481_s9] sm:$0xf] %vm1186_vm14, %v1184_v2 }
  0xf5 PF: > { %s17_s26 = sadd.s32 1, %s1567_s26   ;;  %s1896_s24 = smov %s1563_s25 }
  0xf6   : > { %p14_p5 = scmp.ge.s32.totalorder %s17_s26, 4   ;;  %s1897_s25 = smov %s1899_s27 }
  0xf8   :  { %16 = sbr.rel (!%p14_p5) target bundleno = 2 (0x2), region = 114 }

// kernel: dna_embedding_mamba_forward.15
= control target key start
LH: loop header
LB: loop body
LE: loop exit
PB: predicated region body
PF: predicated region fallthrough
CT: control target
= control target key end

     0   :  { %vm51_vm0 = vcmask 523264   ;;  %vm71_vm1 = vcmask 257024   ;;  %s140_s1 = inlined_call_operand.vmem [shape: bf16[64,32], index: 1, kind: input, shape index: {}]   ;;  %s141_s0 = inlined_call_operand.vmem [shape: bf16[16,64], index: 0, kind: input, shape index: {}]   ;;  %s142_s2 = inlined_call_operand.vmem [shape: bf16[16,32], index: 2, kind: output, shape index: {}]  }
   0x1   :  { %v103_v0 = vld [vmem:[%s140_s1 + $0x18] sm:$0xff]  ;;  %v102_v1 = vld [vmem:[%s140_s1 + $0x10] sm:$0xff]  ;;  %v101_v2 = vld [vmem:[%s140_s1 + $0x8] sm:$0xff] }
   0x2   :  { %59 = vmatpush.bf16.msra.mxu0 %v103_v0  ;;  %v100_v3 = vld [vmem:[%s140_s1] sm:$0xff] }
   0x3   :  { %v99_v4 = vld [vmem:[%s141_s0] sm:$0xff] }
   0x6   :  { %60 = vmatpush.bf16.msra.mxu0 %v102_v1 }
   0xa   :  { %61 = vmatpush.bf16.msra.mxu0 %v101_v2 }
   0xe   :  { %62 = vmatpush.bf16.msra.mxu0 %v100_v3 }
  0x11   :  { %98 = vmatmul.msk.bf16.vlgmr.msra.gmra.mxu0 %vm51_vm0, %v99_v4 }
  0x8e   :  { %v64_v5 = vpop.f32.mrf.mxu0 }
  0x8f   :  { %v69_v6 = vpack.c.bf16 %v64_v5, %v64_v5 }
  0x91   :  { %72 = vst.msk [vmem:[%s142_s2] sm:$0xf] %vm71_vm1, %v69_v6 }
  0x96   :  { %v66_v7 = vpop.f32.mrf.mxu0 }
  0x97   :  { %v70_v8 = vpack.c.bf16 %v66_v7, %v66_v7 }
  0x99   :  { %73 = vst.msk [vmem:[%s142_s2 + $0x4] sm:$0xf] %vm71_vm1, %v70_v8 }

// kernel: dna_embedding_mamba_forward.21
= control target key start
LH: loop header
LB: loop body
LE: loop exit
PB: predicated region body
PF: predicated region fallthrough
CT: control target
= control target key end

     0   :  { %s196_s0 = inlined_call_operand.vmem [shape: bf16[16,32], index: 0, kind: input, shape index: {}]   ;;  %s197_s1 = inlined_call_operand.vmem [shape: f32[16,32], index: 1, kind: input, shape index: {}, may-alias: {1,4}]   ;;  %s198_s2 = inlined_call_operand.vmem [shape: f32[1,32], index: 2, kind: input, shape index: {}]   ;;  %s199_s3 = inlined_call_operand.hbm [shape: f32[16,32], index: 3, kind: output, shape index: {0}]   ;;  %s200_s4 = inlined_call_operand.vmem [shape: f32[16,32], index: 4, kind: output, shape index: {1}, may-alias: {1,4}]  }
   0x1   :  { %v100_v0 = vld [vmem:[%s196_s0] sm:$0xff]   ;;  %v22_v4 = vld [vmem:[%s197_s1 + $0x8] sm:$0xff] }
   0x2   :  { %v21_v1 = vld [vmem:[%s197_s1] sm:$0xff]  ;;  %v101_v2 = vunpack.c.l.bf16 %v100_v0  ;;  %v102_v3 = vunpack.c.h.bf16 %v100_v0 }
   0x3   :  { %10 = vsyncpa [#allocation3], 0  ;;  %vm25_vm0 = vcmask 261120   ;;  %v140_v11 = vmov 32.0   ;;  %v107_v32 = vld [vmem:[%s198_s2] ss:$0 sm:$0xff] }
   0x4   :  { %v23_v5 = vadd.f32 %v101_v2, %v21_v1  ;;  %v24_v6 = vadd.f32 %v102_v3, %v22_v4  ;;  %108 = vrcp.f32 %v140_v11  ;;  %s141_s24 = smov [#allocation2]   ;;  %s83_s28 = sshll.u32 %s199_s3, 4  ;;  %s84_s28 = int_to_ptr.hbm [resolvable:$true] %s83_s28 }
   0x5   :  { %s81_s25 = sshll.u32 %s141_s24, 4  ;;  %s142_s2 = smov 128   ;;  %s82_s25 = int_to_ptr.vmem [resolvable:$true] %s81_s25 }
   0x6   :  { %v28_v7 = vmul.f32 %v23_v5, %v23_v5  ;;  %26 = vst.msk [vmem:[%s200_s4] sm:$0xff] %vm25_vm0, %v23_v5  ;;  %v29_v9 = vmul.f32 %v24_v6, %v24_v6  ;;  %s143_s29 = smov 8  }
   0x7   :  { %27 = vst.msk [vmem:[%s200_s4 + $0x8] sm:$0xff] %vm25_vm0, %v24_v6 }
   0x8   :  { %v30_v8 = vsel %vm25_vm0, %v28_v7, 0.0  ;;  %v33_v10 = vsel %vm25_vm0, %v29_v9, 0.0 }
   0x9   :  { %31 = vadd.xlane.f32.xlu0 %v30_v8 }
   0xa   :  { %v109_v12 = vpop.eup %108 }
   0xb   :  { %v37_v13 = vmul.f32 32.0, %v109_v12  ;;  %vm41_vm1 = vweird.f32 %v109_v12 }
   0xd   :  { %v38_v14 = vsub.f32 1.0, %v37_v13 }
   0xf   :  { %v39_v15 = vmul.f32 %v109_v12, %v38_v14 }
  0x11   :  { %34 = vadd.xlane.f32.xlu0 %v33_v10  ;;  %v40_v16 = vadd.f32 %v109_v12, %v39_v15 }
  0x13   :  { %v42_v17 = vsel %vm41_vm1, %v109_v12, %v40_v16 }
  0x7c   :  { %v32_v18 = vpop.xlane.xlu0 %31 }
  0x7d   :  { %v43_v19 = vmul.f32 %v42_v17, %v32_v18 }
  0x7f   :  { %v45_v20 = vadd.f32 1e-05, %v43_v19 }
  0x81   :  { %110 = vrsqrt.f32 %v45_v20  ;;  %vm53_vm3 = vweird.f32 %v45_v20 }
  0x84   :  { %v35_v21 = vpop.xlane.xlu0 %34 }
  0x85   :  { %v44_v22 = vmul.f32 %v42_v17, %v35_v21 }
  0x87   :  { %v111_v23 = vpop.eup %110  ;;  %v46_v24 = vadd.f32 1e-05, %v44_v22 }
  0x88   :  { %v48_v25 = vmul.f32 %v111_v23, %v45_v20  ;;  %vm54_vm2 = vweird.f32 %v111_v23 }
  0x89   :  { %112 = vrsqrt.f32 %v46_v24  ;;  %vm55_vm4 = vmor %vm53_vm3, %vm54_vm2  ;;  %vm63_vm6 = vweird.f32 %v46_v24 }
  0x8a   :  { %v49_v26 = vmul.f32 %v111_v23, %v48_v25 }
  0x8c   :  { %v50_v27 = vmul.f32 0.5, %v49_v26 }
  0x8e   :  { %v51_v28 = vsub.f32 1.5, %v50_v27 }
  0x8f   :  { %v113_v29 = vpop.eup %112 }
  0x90   :  { %v52_v30 = vmul.f32 %v111_v23, %v51_v28  ;;  %v58_v31 = vmul.f32 %v113_v29, %v46_v24  ;;  %vm64_vm5 = vweird.f32 %v113_v29 }
  0x91   :  { %vm65_vm7 = vmor %vm63_vm6, %vm64_vm5 }
  0x92   :  { %v56_v33 = vsel %vm55_vm4, %v111_v23, %v52_v30  ;;  %v59_v34 = vmul.f32 %v113_v29, %v58_v31 }
  0x93   :  { %v67_v35 = vmul.f32 %v56_v33, %v23_v5 }
  0x94   :  { %v60_v36 = vmul.f32 0.5, %v59_v34 }
  0x95   :  { %v73_v37 = vmul.f32 %v107_v32, %v67_v35 }
  0x96   :  { %v61_v38 = vsub.f32 1.5, %v60_v36 }
  0x97   :  { %75 = vst.msk [vmem:[#allocation2] sm:$0xff] %vm25_vm0, %v73_v37 }
  0x98   :  { %v62_v39 = vmul.f32 %v113_v29, %v61_v38 }
  0x9a   :  { %v66_v40 = vsel %vm65_vm7, %v113_v29, %v62_v39 }
  0x9b   :  { %v68_v41 = vmul.f32 %v66_v40, %v24_v6 }
  0x9d   :  { %v74_v42 = vmul.f32 %v107_v32, %v68_v41 }
  0x9f   :  { %76 = vst.msk [vmem:[#allocation2 + $0x8] sm:$0xff] %vm25_vm0, %v74_v42 }
  0xa0   :  { %89 = dma.vmem_to_hbm [thread:$0]  %s82_s25, 256, %s84_s28, [#allocation3], %s142_s2, %s142_s2, %s143_s29  }
  0xa1   :  { %138 = dma.done.wait [#allocation3], 256  }
  0xa2   :  { %139 = vsyncadd [#allocation3], 4294967040 }
  0xa3   :  { %98 = vsyncpa [#allocation3], 1 }

// kernel: dna_embedding_mamba_forward.16
= control target key start
LH: loop header
LB: loop body
LE: loop exit
PB: predicated region body
PF: predicated region fallthrough
CT: control target
= control target key end

     0   :  { %vm32_vm0 = vcmask 261120   ;;  %v201_v11 = vmov 32.0   ;;  %vm118_vm8 = vcmask 519168   ;;  %s290_s0 = inlined_call_operand.vmem [shape: bf16[16,32], index: 0, kind: input, shape index: {}]   ;;  %s291_s1 = inlined_call_operand.vmem [shape: f32[16,32], index: 1, kind: input, shape index: {}, may-alias: {1,7}]   ;;  %s292_s7 = inlined_call_operand.vmem [shape: f32[16,32], index: 7, kind: output, shape index: {2}, may-alias: {1,7}]   ;;  %s293_s2 = inlined_call_operand.vmem [shape: f32[1,32], index: 2, kind: input, shape index: {}]   ;;  %s294_s3 = inlined_call_operand.vmem [shape: bf16[32,64], index: 3, kind: input, shape index: {}]   ;;  %s295_s4 = inlined_call_operand.vmem [shape: bf16[32,64], index: 4, kind: input, shape index: {}]   ;;  %s296_s5 = inlined_call_operand.vmem [shape: bf16[16,64], index: 5, kind: output, shape index: {0}]   ;;  %s297_s6 = inlined_call_operand.vmem [shape: bf16[16,64], index: 6, kind: output, shape index: {1}]  }
   0x1   :  { %v190_v0 = vld [vmem:[%s290_s0] sm:$0xff]   ;;  %v29_v4 = vld [vmem:[%s291_s1 + $0x8] sm:$0xff]  ;;  %195 = vrcp.f32 %v201_v11 }
   0x2   :  { %v28_v1 = vld [vmem:[%s291_s1] sm:$0xff]  ;;  %v191_v2 = vunpack.c.l.bf16 %v190_v0  ;;  %v192_v3 = vunpack.c.h.bf16 %v190_v0  ;;  %v186_v17 = vld [vmem:[%s294_s3 + $0x8] sm:$0xff] }
   0x3   :  { %v188_v18 = vld [vmem:[%s295_s4 + $0x8] sm:$0xff]  ;;  %108 = vmatpush.bf16.msra.mxu0 %v186_v17  ;;  %v185_v20 = vld [vmem:[%s294_s3] sm:$0xff] }
   0x4   :  { %v30_v5 = vadd.f32 %v191_v2, %v28_v1  ;;  %v31_v6 = vadd.f32 %v192_v3, %v29_v4  ;;  %143 = vmatpush.bf16.msra.mxu1 %v188_v18  ;;  %v187_v21 = vld [vmem:[%s295_s4] sm:$0xff] }
   0x5   :  { %v194_v42 = vld [vmem:[%s293_s2] ss:$0 sm:$0xff] }
   0x6   :  { %v35_v7 = vmul.f32 %v30_v5, %v30_v5  ;;  %33 = vst.msk [vmem:[%s292_s7] sm:$0xff] %vm32_vm0, %v30_v5  ;;  %v36_v9 = vmul.f32 %v31_v6, %v31_v6 }
   0x7   :  { %34 = vst.msk [vmem:[%s292_s7 + $0x8] sm:$0xff] %vm32_vm0, %v31_v6  ;;  %v196_v12 = vpop.eup %195  ;;  %109 = vmatpush.bf16.msra.mxu0 %v185_v20 }
   0x8   :  { %v37_v8 = vsel %vm32_vm0, %v35_v7, 0.0  ;;  %v40_v10 = vsel %vm32_vm0, %v36_v9, 0.0  ;;  %v44_v13 = vmul.f32 32.0, %v196_v12  ;;  %vm48_vm1 = vweird.f32 %v196_v12  ;;  %144 = vmatpush.bf16.msra.mxu1 %v187_v21 }
   0x9   :  { %38 = vadd.xlane.f32.xlu0 %v37_v8 }
   0xa   :  { %v45_v14 = vsub.f32 1.0, %v44_v13 }
   0xc   :  { %v46_v15 = vmul.f32 %v196_v12, %v45_v14 }
   0xe   :  { %v47_v16 = vadd.f32 %v196_v12, %v46_v15 }
  0x10   :  { %v49_v19 = vsel %vm48_vm1, %v196_v12, %v47_v16 }
  0x11   :  { %41 = vadd.xlane.f32.xlu0 %v40_v10 }
  0x7c   :  { %v39_v22 = vpop.xlane.xlu0 %38 }
  0x7d   :  { %v50_v23 = vmul.f32 %v49_v19, %v39_v22 }
  0x7f   :  { %v52_v24 = vadd.f32 1e-05, %v50_v23 }
  0x81   :  { %197 = vrsqrt.f32 %v52_v24  ;;  %vm60_vm3 = vweird.f32 %v52_v24 }
  0x84   :  { %v42_v25 = vpop.xlane.xlu0 %41 }
  0x85   :  { %v51_v26 = vmul.f32 %v49_v19, %v42_v25 }
  0x87   :  { %v198_v27 = vpop.eup %197  ;;  %v53_v28 = vadd.f32 1e-05, %v51_v26 }
  0x88   :  { %v55_v29 = vmul.f32 %v198_v27, %v52_v24  ;;  %vm61_vm2 = vweird.f32 %v198_v27 }
  0x89   :  { %199 = vrsqrt.f32 %v53_v28  ;;  %vm62_vm4 = vmor %vm60_vm3, %vm61_vm2  ;;  %vm70_vm6 = vweird.f32 %v53_v28 }
  0x8a   :  { %v56_v30 = vmul.f32 %v198_v27, %v55_v29 }
  0x8c   :  { %v57_v31 = vmul.f32 0.5, %v56_v30 }
  0x8e   :  { %v58_v32 = vsub.f32 1.5, %v57_v31 }
  0x8f   :  { %v200_v33 = vpop.eup %199 }
  0x90   :  { %v65_v34 = vmul.f32 %v200_v33, %v53_v28  ;;  %v59_v35 = vmul.f32 %v198_v27, %v58_v32  ;;  %vm71_vm5 = vweird.f32 %v200_v33 }
  0x91   :  { %vm72_vm7 = vmor %vm70_vm6, %vm71_vm5 }
  0x92   :  { %v66_v36 = vmul.f32 %v200_v33, %v65_v34  ;;  %v63_v38 = vsel %vm62_vm4, %v198_v27, %v59_v35 }
  0x93   :  { %v74_v41 = vmul.f32 %v63_v38, %v30_v5 }
  0x94   :  { %v67_v37 = vmul.f32 0.5, %v66_v36 }
  0x95   :  { %v80_v45 = vmul.f32 %v194_v42, %v74_v41 }
  0x96   :  { %v68_v39 = vsub.f32 1.5, %v67_v37 }
  0x98   :  { %v69_v40 = vmul.f32 %v200_v33, %v68_v39 }
  0x9a   :  { %v73_v43 = vsel %vm72_vm7, %v200_v33, %v69_v40 }
  0x9b   :  { %v75_v44 = vmul.f32 %v73_v43, %v31_v6 }
  0x9d   :  { %v81_v46 = vmul.f32 %v194_v42, %v75_v44 }
  0x9f   :  { %v82_v47 = vpack.c.bf16 %v81_v46, %v80_v45 }
  0xa1   :  { %175 = vmatmul.msk.bf16.vlgmr.msra.gmra.mxu0 %vm32_vm0, %v82_v47  ;;  %184 = vmatmul.msk.bf16.vlgmr.msra.gmra.mxu1 %vm32_vm0, %v82_v47 }
 0x11e   :  { %v111_v48 = vpop.f32.mrf.mxu0  ;;  %v146_v49 = vpop.f32.mrf.mxu1 }
 0x11f   :  { %v116_v50 = vpack.c.bf16 %v111_v48, %v111_v48  ;;  %v151_v51 = vpack.c.bf16 %v146_v49, %v146_v49 }
 0x121   :  { %119 = vst.msk [vmem:[%s296_s5] sm:$0xf] %vm118_vm8, %v116_v50 }
 0x122   :  { %153 = vst.msk [vmem:[%s297_s6] sm:$0xf] %vm118_vm8, %v151_v51 }
 0x126   :  { %v113_v52 = vpop.f32.mrf.mxu0  ;;  %v148_v53 = vpop.f32.mrf.mxu1 }
 0x127   :  { %v117_v54 = vpack.c.bf16 %v113_v52, %v113_v52  ;;  %v152_v55 = vpack.c.bf16 %v148_v53, %v148_v53 }
 0x129   :  { %120 = vst.msk [vmem:[%s296_s5 + $0x4] sm:$0xf] %vm118_vm8, %v117_v54 }
 0x12a   :  { %154 = vst.msk [vmem:[%s297_s6 + $0x4] sm:$0xf] %vm118_vm8, %v152_v55 }

</bundles_post_ra>
